<compile_context>
chip_gen: v5e
topology: v5e:2x2
jax: 0.10.0
libtpu: 0.0.40
codegen_flags: <defaults>
</compile_context>

<pallas_src>
import jax
import jax.numpy as jnp
from jax.experimental import pallas as pl
from jax.experimental.pallas import tpu as pltpu


def _round_up(x, m):
    return (x + m - 1) // m * m


# ---------------------------------------------------------------------------
# Kernel
# ---------------------------------------------------------------------------
def gpn_kernel(x_ref, bias_ref, *refs):
    """Fused GPN forward on one (TB, D_in) batch tile.

    refs = (w0, ..., w10, out_ref). Weights are pre-transposed (in, out); the first
    three are the fused preModel branch weights whose layer-3 output is already the
    concatenation [x_polar | y_polar | properties] in the original cat order.
    """
    out_ref = refs[-1]
    w_refs = refs[:-1]

    h = x_ref[...].astype(jnp.float32)
    for i, w_ref in enumerate(w_refs):
        w = w_ref[...]                                   # (K, N), bf16 resident
        n = w.shape[1]
        y = jnp.dot(h.astype(w.dtype), w, preferred_element_type=jnp.float32)
        y = y + bias_ref[i : i + 1, :n]                  # f32 bias row, static slice
        h = jnp.maximum(y, 0.0)                          # ReLU after every layer (incl. fc8)
    out_ref[...] = h.astype(out_ref.dtype)


# ---------------------------------------------------------------------------
# Wrapper
# ---------------------------------------------------------------------------
def gpn_forward(x, weights, bias_pack, *, tb=256):
    """x: (B, D_in) f32. weights: 11 pre-transposed (in, out) arrays. bias_pack: (11, P) f32."""
    B, d_in = x.shape
    C = weights[-1].shape[1]

    tb = min(tb, _round_up(B, 8))          # f32 sublane alignment
    b_pad = _round_up(B, tb)
    if b_pad != B:
        x = jnp.pad(x, ((0, b_pad - B), (0, 0)))
    grid = (b_pad // tb,)

    def full_spec(a):
        # Whole-array block, constant index -> DMA'd once, VMEM-resident across tiles.
        return pl.BlockSpec(a.shape, lambda i: (0,) * a.ndim)

    in_specs = (
        [pl.BlockSpec((tb, d_in), lambda i: (i, 0)), full_spec(bias_pack)]
        + [full_spec(w) for w in weights]
    )
    out_spec = pl.BlockSpec((tb, C), lambda i: (i, 0))

    out = pl.pallas_call(
        gpn_kernel,
        out_shape=jax.ShapeDtypeStruct((b_pad, C), jnp.float32),
        grid=grid,
        in_specs=in_specs,
        out_specs=out_spec,
        compiler_params=pltpu.CompilerParams(
            dimension_semantics=("parallel",),
        ),
    )(x, bias_pack, *weights)
    return out[:B]


# ---------------------------------------------------------------------------
# Parameter construction (matches the PyTorch module's init), then host-side packing
# ---------------------------------------------------------------------------
def _kaiming_w(key, fan_in, fan_out):
    # kaiming_normal_, mode='fan_in', gain=sqrt(2); stored pre-transposed as (in, out).
    std = (2.0 / fan_in) ** 0.5
    return jax.random.normal(key, (fan_in, fan_out), jnp.float32) * std


def _linear_b(key, fan_in, fan_out):
    # PyTorch Linear default bias: U(-1/sqrt(fan_in), 1/sqrt(fan_in)).
    bound = 1.0 / (fan_in ** 0.5)
    return jax.random.uniform(key, (fan_out,), jnp.float32, -bound, bound)


def _block_diag(mats):
    rows = sum(m.shape[0] for m in mats)
    cols = sum(m.shape[1] for m in mats)
    out = jnp.zeros((rows, cols), mats[0].dtype)
    r = c = 0
    for m in mats:
        out = out.at[r : r + m.shape[0], c : c + m.shape[1]].set(m)
        r += m.shape[0]
        c += m.shape[1]
    return out


def make_gpn_params(key, d_in, h_pre, c_pre, h, c, weight_dtype=jnp.bfloat16):
    """Returns (weights, bias_pack) for the fused GPN forward.

    weights: 11 arrays, (in, out), weight_dtype.
      [0:3)  fused preModel branches (block-diagonal for layers 2/3)
      [3:11) main stack fc1..fc8
    bias_pack: (11, 128-padded) f32 table, row i = bias of layer i (zero-padded).
    """
    keys = iter(jax.random.split(key, 64))

    br_w = [[], [], []]
    br_b = [[], [], []]
    for br in range(3):
        for fi, fo in [(d_in, h_pre), (h_pre, h_pre), (h_pre, c_pre)]:
            br_w[br].append(_kaiming_w(next(keys), fi, fo))
            br_b[br].append(_linear_b(next(keys), fi, fo))

    weights = [
        jnp.concatenate([br_w[0][0], br_w[1][0], br_w[2][0]], axis=1),   # (d_in, 3*h_pre)
        _block_diag([br_w[0][1], br_w[1][1], br_w[2][1]]),               # (3h_pre, 3h_pre)
        _block_diag([br_w[0][2], br_w[1][2], br_w[2][2]]),               # (3h_pre, 3c_pre)
    ]
    biases = [
        jnp.concatenate([br_b[0][0], br_b[1][0], br_b[2][0]]),
        jnp.concatenate([br_b[0][1], br_b[1][1], br_b[2][1]]),
        jnp.concatenate([br_b[0][2], br_b[1][2], br_b[2][2]]),
    ]

    d_cat = 3 * c_pre   # GPN input_size = sum of branch num_classes
    for fi, fo in [(d_cat, h)] + [(h, h)] * 6 + [(h, c)]:
        weights.append(_kaiming_w(next(keys), fi, fo))
        biases.append(_linear_b(next(keys), fi, fo))

    weights = [w.astype(weight_dtype) for w in weights]

    pad_w = _round_up(max(b.shape[0] for b in biases), 128)
    bias_pack = jnp.zeros((len(biases), pad_w), jnp.float32)
    for i, b in enumerate(biases):
        bias_pack = bias_pack.at[i, : b.shape[0]].set(b)

    return weights, bias_pack


def gpn_reference(x, weights, bias_pack):
    """Plain-JAX reference with identical math (checks grid/tiling/bias plumbing)."""
    h = x.astype(jnp.float32)
    for i, w in enumerate(weights):
        n = w.shape[1]
        y = jnp.dot(h.astype(w.dtype), w, preferred_element_type=jnp.float32)
        h = jnp.maximum(y + bias_pack[i, :n][None, :], 0.0)
    return h


# ---------------------------------------------------------------------------
if __name__ == "__main__":
    B = 256        # batch (exercises the grid: 2 tiles of 128)
    D_in = 64      # flattened per-sample features into each preModel
    H_pre = 32     # preModel hidden_size
    C_pre = 16     # preModel num_classes
    H = 32         # GPN hidden_size
    C = 8          # GPN num_classes

    key = jax.random.PRNGKey(0)
    pkey, xkey = jax.random.split(key)

    weights, bias_pack = make_gpn_params(pkey, D_in, H_pre, C_pre, H, C)
    x = jax.random.normal(xkey, (B, D_in), jnp.float32)

    out = gpn_forward(x, weights, bias_pack, tb=128)
    jax.block_until_ready(out)

    assert out.shape == (B, C) and out.dtype == jnp.float32
    ref = gpn_reference(x, weights, bias_pack)
    assert jnp.allclose(out, ref, rtol=1e-3, atol=1e-3), "kernel/reference mismatch"

    print("KERNEL_OK")
</pallas_src>

<mosaic_0001>
module attributes {stable_mosaic.version = 11 : i64} {
  func.func @gpn_kernel(%arg0: i32, %arg1: memref<128x64xf32, #tpu.memory_space<vmem>>, %arg2: memref<11x128xf32, #tpu.memory_space<vmem>>, %arg3: memref<64x96xbf16, #tpu.memory_space<vmem>>, %arg4: memref<96x96xbf16, #tpu.memory_space<vmem>>, %arg5: memref<96x48xbf16, #tpu.memory_space<vmem>>, %arg6: memref<48x32xbf16, #tpu.memory_space<vmem>>, %arg7: memref<32x32xbf16, #tpu.memory_space<vmem>>, %arg8: memref<32x32xbf16, #tpu.memory_space<vmem>>, %arg9: memref<32x32xbf16, #tpu.memory_space<vmem>>, %arg10: memref<32x32xbf16, #tpu.memory_space<vmem>>, %arg11: memref<32x32xbf16, #tpu.memory_space<vmem>>, %arg12: memref<32x32xbf16, #tpu.memory_space<vmem>>, %arg13: memref<32x8xbf16, #tpu.memory_space<vmem>>, %arg14: memref<128x8xf32, #tpu.memory_space<vmem>>) attributes {dimension_semantics = [#tpu.dimension_semantics<parallel>], iteration_bounds = array<i64: 2>, scalar_prefetch = 0 : i64, scratch_operands = 0 : i64, tpu.core_type = #tpu.core_type<tc>, window_params = [{transform_indices = @transform_0, window_bounds = array<i64: 128, 64>}, {pipeline_mode = #tpu.pipeline_mode<synchronous>, transform_indices = @transform_1, window_bounds = array<i64: 11, 128>}, {pipeline_mode = #tpu.pipeline_mode<synchronous>, transform_indices = @transform_2, window_bounds = array<i64: 64, 96>}, {pipeline_mode = #tpu.pipeline_mode<synchronous>, transform_indices = @transform_3, window_bounds = array<i64: 96, 96>}, {pipeline_mode = #tpu.pipeline_mode<synchronous>, transform_indices = @transform_4, window_bounds = array<i64: 96, 48>}, {pipeline_mode = #tpu.pipeline_mode<synchronous>, transform_indices = @transform_5, window_bounds = array<i64: 48, 32>}, {pipeline_mode = #tpu.pipeline_mode<synchronous>, transform_indices = @transform_6, window_bounds = array<i64: 32, 32>}, {pipeline_mode = #tpu.pipeline_mode<synchronous>, transform_indices = @transform_7, window_bounds = array<i64: 32, 32>}, {pipeline_mode = #tpu.pipeline_mode<synchronous>, transform_indices = @transform_8, window_bounds = array<i64: 32, 32>}, {pipeline_mode = #tpu.pipeline_mode<synchronous>, transform_indices = @transform_9, window_bounds = array<i64: 32, 32>}, {pipeline_mode = #tpu.pipeline_mode<synchronous>, transform_indices = @transform_10, window_bounds = array<i64: 32, 32>}, {pipeline_mode = #tpu.pipeline_mode<synchronous>, transform_indices = @transform_11, window_bounds = array<i64: 32, 32>}, {pipeline_mode = #tpu.pipeline_mode<synchronous>, transform_indices = @transform_12, window_bounds = array<i64: 32, 8>}, {transform_indices = @transform_13, window_bounds = array<i64: 128, 8>}]} {
    %c0 = arith.constant 0 : index
    %c0_0 = arith.constant 0 : index
    %0 = vector.load %arg1[%c0, %c0_0] : memref<128x64xf32, #tpu.memory_space<vmem>>, vector<128x64xf32>
    %c0_1 = arith.constant 0 : index
    %c0_2 = arith.constant 0 : index
    %1 = vector.load %arg3[%c0_1, %c0_2] : memref<64x96xbf16, #tpu.memory_space<vmem>>, vector<64x96xbf16>
    %2 = arith.truncf %0 : vector<128x64xf32> to vector<128x64xbf16>
    %cst = arith.constant dense<0.000000e+00> : vector<128x96xf32>
    %3 = tpu.matmul %2, %1, %cst {dimension_numbers = #tpu.dot_dimension_numbers<[1], [0], [0], [1], [0, 0, 1, 1], [], []>} : vector<128x64xbf16>, vector<64x96xbf16>, vector<128x96xf32> -> vector<128x96xf32>
    %c0_3 = arith.constant 0 : index
    %c0_4 = arith.constant 0 : index
    %4 = vector.load %arg2[%c0_3, %c0_4] : memref<11x128xf32, #tpu.memory_space<vmem>>, vector<1x96xf32>
    %5 = vector.broadcast %4 : vector<1x96xf32> to vector<128x96xf32>
    %6 = arith.addf %3, %5 : vector<128x96xf32>
    %cst_5 = arith.constant 0.000000e+00 : f32
    %7 = vector.broadcast %cst_5 : f32 to vector<128x96xf32>
    %8 = arith.maximumf %6, %7 : vector<128x96xf32>
    %c0_6 = arith.constant 0 : index
    %c0_7 = arith.constant 0 : index
    %9 = vector.load %arg4[%c0_6, %c0_7] : memref<96x96xbf16, #tpu.memory_space<vmem>>, vector<96x96xbf16>
    %10 = arith.truncf %8 : vector<128x96xf32> to vector<128x96xbf16>
    %cst_8 = arith.constant dense<0.000000e+00> : vector<128x96xf32>
    %11 = tpu.matmul %10, %9, %cst_8 {dimension_numbers = #tpu.dot_dimension_numbers<[1], [0], [0], [1], [0, 0, 1, 1], [], []>} : vector<128x96xbf16>, vector<96x96xbf16>, vector<128x96xf32> -> vector<128x96xf32>
    %c1 = arith.constant 1 : index
    %c0_9 = arith.constant 0 : index
    %12 = vector.load %arg2[%c1, %c0_9] : memref<11x128xf32, #tpu.memory_space<vmem>>, vector<1x96xf32>
    %13 = vector.broadcast %12 : vector<1x96xf32> to vector<128x96xf32>
    %14 = arith.addf %11, %13 : vector<128x96xf32>
    %cst_10 = arith.constant 0.000000e+00 : f32
    %15 = vector.broadcast %cst_10 : f32 to vector<128x96xf32>
    %16 = arith.maximumf %14, %15 : vector<128x96xf32>
    %c0_11 = arith.constant 0 : index
    %c0_12 = arith.constant 0 : index
    %17 = vector.load %arg5[%c0_11, %c0_12] : memref<96x48xbf16, #tpu.memory_space<vmem>>, vector<96x48xbf16>
    %18 = arith.truncf %16 : vector<128x96xf32> to vector<128x96xbf16>
    %cst_13 = arith.constant dense<0.000000e+00> : vector<128x48xf32>
    %19 = tpu.matmul %18, %17, %cst_13 {dimension_numbers = #tpu.dot_dimension_numbers<[1], [0], [0], [1], [0, 0, 1, 1], [], []>} : vector<128x96xbf16>, vector<96x48xbf16>, vector<128x48xf32> -> vector<128x48xf32>
    %c2 = arith.constant 2 : index
    %c0_14 = arith.constant 0 : index
    %20 = vector.load %arg2[%c2, %c0_14] : memref<11x128xf32, #tpu.memory_space<vmem>>, vector<1x48xf32>
    %21 = vector.broadcast %20 : vector<1x48xf32> to vector<128x48xf32>
    %22 = arith.addf %19, %21 : vector<128x48xf32>
    %cst_15 = arith.constant 0.000000e+00 : f32
    %23 = vector.broadcast %cst_15 : f32 to vector<128x48xf32>
    %24 = arith.maximumf %22, %23 : vector<128x48xf32>
    %c0_16 = arith.constant 0 : index
    %c0_17 = arith.constant 0 : index
    %25 = vector.load %arg6[%c0_16, %c0_17] : memref<48x32xbf16, #tpu.memory_space<vmem>>, vector<48x32xbf16>
    %26 = arith.truncf %24 : vector<128x48xf32> to vector<128x48xbf16>
    %cst_18 = arith.constant dense<0.000000e+00> : vector<128x32xf32>
    %27 = tpu.matmul %26, %25, %cst_18 {dimension_numbers = #tpu.dot_dimension_numbers<[1], [0], [0], [1], [0, 0, 1, 1], [], []>} : vector<128x48xbf16>, vector<48x32xbf16>, vector<128x32xf32> -> vector<128x32xf32>
    %c3 = arith.constant 3 : index
    %c0_19 = arith.constant 0 : index
    %28 = vector.load %arg2[%c3, %c0_19] : memref<11x128xf32, #tpu.memory_space<vmem>>, vector<1x32xf32>
    %29 = vector.broadcast %28 : vector<1x32xf32> to vector<128x32xf32>
    %30 = arith.addf %27, %29 : vector<128x32xf32>
    %cst_20 = arith.constant 0.000000e+00 : f32
    %31 = vector.broadcast %cst_20 : f32 to vector<128x32xf32>
    %32 = arith.maximumf %30, %31 : vector<128x32xf32>
    %c0_21 = arith.constant 0 : index
    %c0_22 = arith.constant 0 : index
    %33 = vector.load %arg7[%c0_21, %c0_22] : memref<32x32xbf16, #tpu.memory_space<vmem>>, vector<32x32xbf16>
    %34 = arith.truncf %32 : vector<128x32xf32> to vector<128x32xbf16>
    %cst_23 = arith.constant dense<0.000000e+00> : vector<128x32xf32>
    %35 = tpu.matmul %34, %33, %cst_23 {dimension_numbers = #tpu.dot_dimension_numbers<[1], [0], [0], [1], [0, 0, 1, 1], [], []>} : vector<128x32xbf16>, vector<32x32xbf16>, vector<128x32xf32> -> vector<128x32xf32>
    %c4 = arith.constant 4 : index
    %c0_24 = arith.constant 0 : index
    %36 = vector.load %arg2[%c4, %c0_24] : memref<11x128xf32, #tpu.memory_space<vmem>>, vector<1x32xf32>
    %37 = vector.broadcast %36 : vector<1x32xf32> to vector<128x32xf32>
    %38 = arith.addf %35, %37 : vector<128x32xf32>
    %cst_25 = arith.constant 0.000000e+00 : f32
    %39 = vector.broadcast %cst_25 : f32 to vector<128x32xf32>
    %40 = arith.maximumf %38, %39 : vector<128x32xf32>
    %c0_26 = arith.constant 0 : index
    %c0_27 = arith.constant 0 : index
    %41 = vector.load %arg8[%c0_26, %c0_27] : memref<32x32xbf16, #tpu.memory_space<vmem>>, vector<32x32xbf16>
    %42 = arith.truncf %40 : vector<128x32xf32> to vector<128x32xbf16>
    %cst_28 = arith.constant dense<0.000000e+00> : vector<128x32xf32>
    %43 = tpu.matmul %42, %41, %cst_28 {dimension_numbers = #tpu.dot_dimension_numbers<[1], [0], [0], [1], [0, 0, 1, 1], [], []>} : vector<128x32xbf16>, vector<32x32xbf16>, vector<128x32xf32> -> vector<128x32xf32>
    %c5 = arith.constant 5 : index
    %c0_29 = arith.constant 0 : index
    %44 = vector.load %arg2[%c5, %c0_29] : memref<11x128xf32, #tpu.memory_space<vmem>>, vector<1x32xf32>
    %45 = vector.broadcast %44 : vector<1x32xf32> to vector<128x32xf32>
    %46 = arith.addf %43, %45 : vector<128x32xf32>
    %cst_30 = arith.constant 0.000000e+00 : f32
    %47 = vector.broadcast %cst_30 : f32 to vector<128x32xf32>
    %48 = arith.maximumf %46, %47 : vector<128x32xf32>
    %c0_31 = arith.constant 0 : index
    %c0_32 = arith.constant 0 : index
    %49 = vector.load %arg9[%c0_31, %c0_32] : memref<32x32xbf16, #tpu.memory_space<vmem>>, vector<32x32xbf16>
    %50 = arith.truncf %48 : vector<128x32xf32> to vector<128x32xbf16>
    %cst_33 = arith.constant dense<0.000000e+00> : vector<128x32xf32>
    %51 = tpu.matmul %50, %49, %cst_33 {dimension_numbers = #tpu.dot_dimension_numbers<[1], [0], [0], [1], [0, 0, 1, 1], [], []>} : vector<128x32xbf16>, vector<32x32xbf16>, vector<128x32xf32> -> vector<128x32xf32>
    %c6 = arith.constant 6 : index
    %c0_34 = arith.constant 0 : index
    %52 = vector.load %arg2[%c6, %c0_34] : memref<11x128xf32, #tpu.memory_space<vmem>>, vector<1x32xf32>
    %53 = vector.broadcast %52 : vector<1x32xf32> to vector<128x32xf32>
    %54 = arith.addf %51, %53 : vector<128x32xf32>
    %cst_35 = arith.constant 0.000000e+00 : f32
    %55 = vector.broadcast %cst_35 : f32 to vector<128x32xf32>
    %56 = arith.maximumf %54, %55 : vector<128x32xf32>
    %c0_36 = arith.constant 0 : index
    %c0_37 = arith.constant 0 : index
    %57 = vector.load %arg10[%c0_36, %c0_37] : memref<32x32xbf16, #tpu.memory_space<vmem>>, vector<32x32xbf16>
    %58 = arith.truncf %56 : vector<128x32xf32> to vector<128x32xbf16>
    %cst_38 = arith.constant dense<0.000000e+00> : vector<128x32xf32>
    %59 = tpu.matmul %58, %57, %cst_38 {dimension_numbers = #tpu.dot_dimension_numbers<[1], [0], [0], [1], [0, 0, 1, 1], [], []>} : vector<128x32xbf16>, vector<32x32xbf16>, vector<128x32xf32> -> vector<128x32xf32>
    %c7 = arith.constant 7 : index
    %c0_39 = arith.constant 0 : index
    %60 = vector.load %arg2[%c7, %c0_39] : memref<11x128xf32, #tpu.memory_space<vmem>>, vector<1x32xf32>
    %61 = vector.broadcast %60 : vector<1x32xf32> to vector<128x32xf32>
    %62 = arith.addf %59, %61 : vector<128x32xf32>
    %cst_40 = arith.constant 0.000000e+00 : f32
    %63 = vector.broadcast %cst_40 : f32 to vector<128x32xf32>
    %64 = arith.maximumf %62, %63 : vector<128x32xf32>
    %c0_41 = arith.constant 0 : index
    %c0_42 = arith.constant 0 : index
    %65 = vector.load %arg11[%c0_41, %c0_42] : memref<32x32xbf16, #tpu.memory_space<vmem>>, vector<32x32xbf16>
    %66 = arith.truncf %64 : vector<128x32xf32> to vector<128x32xbf16>
    %cst_43 = arith.constant dense<0.000000e+00> : vector<128x32xf32>
    %67 = tpu.matmul %66, %65, %cst_43 {dimension_numbers = #tpu.dot_dimension_numbers<[1], [0], [0], [1], [0, 0, 1, 1], [], []>} : vector<128x32xbf16>, vector<32x32xbf16>, vector<128x32xf32> -> vector<128x32xf32>
    %c8 = arith.constant 8 : index
    %c0_44 = arith.constant 0 : index
    %68 = vector.load %arg2[%c8, %c0_44] : memref<11x128xf32, #tpu.memory_space<vmem>>, vector<1x32xf32>
    %69 = vector.broadcast %68 : vector<1x32xf32> to vector<128x32xf32>
    %70 = arith.addf %67, %69 : vector<128x32xf32>
    %cst_45 = arith.constant 0.000000e+00 : f32
    %71 = vector.broadcast %cst_45 : f32 to vector<128x32xf32>
    %72 = arith.maximumf %70, %71 : vector<128x32xf32>
    %c0_46 = arith.constant 0 : index
    %c0_47 = arith.constant 0 : index
    %73 = vector.load %arg12[%c0_46, %c0_47] : memref<32x32xbf16, #tpu.memory_space<vmem>>, vector<32x32xbf16>
    %74 = arith.truncf %72 : vector<128x32xf32> to vector<128x32xbf16>
    %cst_48 = arith.constant dense<0.000000e+00> : vector<128x32xf32>
    %75 = tpu.matmul %74, %73, %cst_48 {dimension_numbers = #tpu.dot_dimension_numbers<[1], [0], [0], [1], [0, 0, 1, 1], [], []>} : vector<128x32xbf16>, vector<32x32xbf16>, vector<128x32xf32> -> vector<128x32xf32>
    %c9 = arith.constant 9 : index
    %c0_49 = arith.constant 0 : index
    %76 = vector.load %arg2[%c9, %c0_49] : memref<11x128xf32, #tpu.memory_space<vmem>>, vector<1x32xf32>
    %77 = vector.broadcast %76 : vector<1x32xf32> to vector<128x32xf32>
    %78 = arith.addf %75, %77 : vector<128x32xf32>
    %cst_50 = arith.constant 0.000000e+00 : f32
    %79 = vector.broadcast %cst_50 : f32 to vector<128x32xf32>
    %80 = arith.maximumf %78, %79 : vector<128x32xf32>
    %c0_51 = arith.constant 0 : index
    %c0_52 = arith.constant 0 : index
    %81 = vector.load %arg13[%c0_51, %c0_52] : memref<32x8xbf16, #tpu.memory_space<vmem>>, vector<32x8xbf16>
    %82 = arith.truncf %80 : vector<128x32xf32> to vector<128x32xbf16>
    %cst_53 = arith.constant dense<0.000000e+00> : vector<128x8xf32>
    %83 = tpu.matmul %82, %81, %cst_53 {dimension_numbers = #tpu.dot_dimension_numbers<[1], [0], [0], [1], [0, 0, 1, 1], [], []>} : vector<128x32xbf16>, vector<32x8xbf16>, vector<128x8xf32> -> vector<128x8xf32>
    %c10 = arith.constant 10 : index
    %c0_54 = arith.constant 0 : index
    %84 = vector.load %arg2[%c10, %c0_54] : memref<11x128xf32, #tpu.memory_space<vmem>>, vector<1x8xf32>
    %85 = vector.broadcast %84 : vector<1x8xf32> to vector<128x8xf32>
    %86 = arith.addf %83, %85 : vector<128x8xf32>
    %cst_55 = arith.constant 0.000000e+00 : f32
    %87 = vector.broadcast %cst_55 : f32 to vector<128x8xf32>
    %88 = arith.maximumf %86, %87 : vector<128x8xf32>
    %c0_56 = arith.constant 0 : index
    %c0_57 = arith.constant 0 : index
    %89 = vector.load %arg14[%c0_56, %c0_57] : memref<128x8xf32, #tpu.memory_space<vmem>>, vector<128x8xf32>
    tpu.vector_store %arg14[%c0_56, %c0_57], %88 {strides = array<i32>} : memref<128x8xf32, #tpu.memory_space<vmem>>, vector<128x8xf32>,
    return
  }
  func.func @transform_0(%arg0: i32) -> (i32, i32) {
    %c0_i32 = arith.constant 0 : i32
    %c0_i32_0 = arith.constant 0 : i32
    return %arg0, %c0_i32 : i32, i32
  }
  func.func @transform_1(%arg0: i32) -> (i32, i32) {
    %c0_i32 = arith.constant 0 : i32
    %c0_i32_0 = arith.constant 0 : i32
    %c0_i32_1 = arith.constant 0 : i32
    return %c0_i32, %c0_i32_0 : i32, i32
  }
  func.func @transform_2(%arg0: i32) -> (i32, i32) {
    %c0_i32 = arith.constant 0 : i32
    %c0_i32_0 = arith.constant 0 : i32
    %c0_i32_1 = arith.constant 0 : i32
    return %c0_i32, %c0_i32_0 : i32, i32
  }
  func.func @transform_3(%arg0: i32) -> (i32, i32) {
    %c0_i32 = arith.constant 0 : i32
    %c0_i32_0 = arith.constant 0 : i32
    %c0_i32_1 = arith.constant 0 : i32
    return %c0_i32, %c0_i32_0 : i32, i32
  }
  func.func @transform_4(%arg0: i32) -> (i32, i32) {
    %c0_i32 = arith.constant 0 : i32
    %c0_i32_0 = arith.constant 0 : i32
    %c0_i32_1 = arith.constant 0 : i32
    return %c0_i32, %c0_i32_0 : i32, i32
  }
  func.func @transform_5(%arg0: i32) -> (i32, i32) {
    %c0_i32 = arith.constant 0 : i32
    %c0_i32_0 = arith.constant 0 : i32
    %c0_i32_1 = arith.constant 0 : i32
    return %c0_i32, %c0_i32_0 : i32, i32
  }
  func.func @transform_6(%arg0: i32) -> (i32, i32) {
    %c0_i32 = arith.constant 0 : i32
    %c0_i32_0 = arith.constant 0 : i32
    %c0_i32_1 = arith.constant 0 : i32
    return %c0_i32, %c0_i32_0 : i32, i32
  }
  func.func @transform_7(%arg0: i32) -> (i32, i32) {
    %c0_i32 = arith.constant 0 : i32
    %c0_i32_0 = arith.constant 0 : i32
    %c0_i32_1 = arith.constant 0 : i32
    return %c0_i32, %c0_i32_0 : i32, i32
  }
  func.func @transform_8(%arg0: i32) -> (i32, i32) {
    %c0_i32 = arith.constant 0 : i32
    %c0_i32_0 = arith.constant 0 : i32
    %c0_i32_1 = arith.constant 0 : i32
    return %c0_i32, %c0_i32_0 : i32, i32
  }
  func.func @transform_9(%arg0: i32) -> (i32, i32) {
    %c0_i32 = arith.constant 0 : i32
    %c0_i32_0 = arith.constant 0 : i32
    %c0_i32_1 = arith.constant 0 : i32
    return %c0_i32, %c0_i32_0 : i32, i32
  }
  func.func @transform_10(%arg0: i32) -> (i32, i32) {
    %c0_i32 = arith.constant 0 : i32
    %c0_i32_0 = arith.constant 0 : i32
    %c0_i32_1 = arith.constant 0 : i32
    return %c0_i32, %c0_i32_0 : i32, i32
  }
  func.func @transform_11(%arg0: i32) -> (i32, i32) {
    %c0_i32 = arith.constant 0 : i32
    %c0_i32_0 = arith.constant 0 : i32
    %c0_i32_1 = arith.constant 0 : i32
    return %c0_i32, %c0_i32_0 : i32, i32
  }
  func.func @transform_12(%arg0: i32) -> (i32, i32) {
    %c0_i32 = arith.constant 0 : i32
    %c0_i32_0 = arith.constant 0 : i32
    %c0_i32_1 = arith.constant 0 : i32
    return %c0_i32, %c0_i32_0 : i32, i32
  }
  func.func @transform_13(%arg0: i32) -> (i32, i32) {
    %c0_i32 = arith.constant 0 : i32
    %c0_i32_0 = arith.constant 0 : i32
    return %arg0, %c0_i32 : i32, i32
  }
}

</mosaic_0001>

<bundles_post_ra>
// kernel: tpu_custom_call.1
= control target key start
LH: loop header
LB: loop body
LE: loop exit
PB: predicated region body
PF: predicated region fallthrough
CT: control target
= control target key end

     0   :  { %s2265_s25 = smov 0   ;;  %s2741_s0 = inlined_call_operand.vmem [shape: f32[256,64], index: 0, kind: input, shape index: {}]   ;;  %s2742_s1 = inlined_call_operand.vmem [shape: f32[11,128], index: 1, kind: input, shape index: {}]   ;;  %s2743_s2 = inlined_call_operand.vmem [shape: bf16[64,96], index: 2, kind: input, shape index: {}]   ;;  %s2744_s3 = inlined_call_operand.vmem [shape: bf16[96,96], index: 3, kind: input, shape index: {}]   ;;  %s2745_s4 = inlined_call_operand.vmem [shape: bf16[96,48], index: 4, kind: input, shape index: {}]   ;;  %s2746_s5 = inlined_call_operand.vmem [shape: bf16[48,32], index: 5, kind: input, shape index: {}]   ;;  %s2747_s6 = inlined_call_operand.vmem [shape: bf16[32,32], index: 6, kind: input, shape index: {}]   ;;  %s2748_s7 = inlined_call_operand.vmem [shape: bf16[32,32], index: 7, kind: input, shape index: {}]   ;;  %s2749_s8 = inlined_call_operand.vmem [shape: bf16[32,32], index: 8, kind: input, shape index: {}]   ;;  %s2750_s9 = inlined_call_operand.vmem [shape: bf16[32,32], index: 9, kind: input, shape index: {}]   ;;  %s2751_s10 = inlined_call_operand.vmem [shape: bf16[32,32], index: 10, kind: input, shape index: {}]   ;;  %s2752_s11 = inlined_call_operand.vmem [shape: bf16[32,32], index: 11, kind: input, shape index: {}]   ;;  %s2753_s12 = inlined_call_operand.vmem [shape: bf16[32,8], index: 12, kind: input, shape index: {}]   ;;  %s2754_s13 = inlined_call_operand.vmem [shape: f32[256,8], index: 13, kind: output, shape index: {}]  }
   0x1 LB: > { %s1891_s26 = sadd.s32 4294967295, %s2193_s25   ;;  %p1895_p0 = scmp.ge.s32.totalorder %s2193_s25, 1  ;;  %s2193_s25 = sphi %s2265_s25, %s23_s25  }
   0x2   : > { %p388_p1 = scmp.lt.s32.totalorder %s2193_s25, 3 }
   0x4   : > { %p389_p2 = pnand %p1895_p0, %p388_p1 }
   0x5   : > { %s1896_s29 = sshll.u32 (!%p389_p2), %s1891_s26, 4 }
   0x6   : > { %392 = sbr.rel (%p389_p2) target bundleno = 1714 (0x6b2), region = 72  ;;  %p433_p3 = scmp.lt.s32.totalorder (!%p389_p2), %s1896_s29, 31 }
   0xb   : > { %v2125_v0 = vld [vmem:[%s2743_s2 + $0x18] sm:$0xff]  ;;  %v2124_v1 = vld [vmem:[%s2743_s2 + $0x10] sm:$0xff]  ;;  %s2756_s29 = smov (!%p433_p3, %s1896_s29), 31  ;;  %v2123_v2 = vld [vmem:[%s2743_s2 + $0x8] sm:$0xff]  ;;  %vm503_vm0 = vcmask 523264   ;;  %vm651_vm1 = vcmask 785408  }
   0xc   : > { %532 = vmatpush.bf16.msra.mxu0 %v2125_v0  ;;  %2155 = vmatpush.bf16.msra.mxu2 %v2125_v0  ;;  %s1897_s15 = sshll.u32 %s2756_s29, 3  ;;  %v2122_v3 = vld [vmem:[%s2743_s2] sm:$0xff]  ;;  %v2131_v22 = vld [vmem:[%s2744_s3 + $0x28] sm:$0xff]  ;;  %v2129_v29 = vld [vmem:[%s2744_s3 + $0x18] sm:$0xff]  ;;  %vm922_vm2 = vcmask 392192   ;;  %vm1038_vm3 = vcmask 261120  }
   0xd   : > { %s2290_s20 = scalar_lea.vmem %s2741_s0, %s1897_s15  ;;  %678 = vmatpush.bf16.msra.mxu1 %v2131_v22  ;;  %v2130_v23 = vld [vmem:[%s2744_s3 + $0x20] sm:$0xff]  ;;  %v2128_v31 = vld [vmem:[%s2744_s3 + $0x10] sm:$0xff]  ;;  %v2127_v32 = vld [vmem:[%s2744_s3 + $0x8] sm:$0xff]  ;;  %s2689_s21 = scalar_lea.vmem %s2754_s13, %s1897_s15  ;;  %vm1818_vm4 = vcmask 64512  }
   0xe   : > { %v445_v4 = vld [vmem:[%s2290_s20] sm:$0xff]  ;;  %v446_v5 = vld [vmem:[%s2290_s20 + $0x8] sm:$0xff]  ;;  %v447_v7 = vld [vmem:[%s2290_s20 + $0x10] sm:$0xff] }
   0xf   : > { %v469_v6 = vpack.c.bf16 %v446_v5, %v445_v4  ;;  %v448_v8 = vld [vmem:[%s2290_s20 + $0x18] sm:$0xff]  ;;  %v449_v10 = vld [vmem:[%s2290_s20 + $0x20] sm:$0xff]  ;;  %v450_v11 = vld [vmem:[%s2290_s20 + $0x28] sm:$0xff] }
  0x10   : > { %533 = vmatpush.bf16.msra.mxu0 %v2124_v1  ;;  %2156 = vmatpush.bf16.msra.mxu2 %v2124_v1  ;;  %v470_v9 = vpack.c.bf16 %v448_v8, %v447_v7  ;;  %v471_v12 = vpack.c.bf16 %v450_v11, %v449_v10  ;;  %v451_v13 = vld [vmem:[%s2290_s20 + $0x30] sm:$0xff]  ;;  %v452_v14 = vld [vmem:[%s2290_s20 + $0x38] sm:$0xff]  ;;  %v453_v16 = vld [vmem:[%s2290_s20 + $0x40] sm:$0xff] }
  0x11   : > { %v472_v15 = vpack.c.bf16 %v452_v14, %v451_v13  ;;  %v454_v17 = vld [vmem:[%s2290_s20 + $0x48] sm:$0xff]  ;;  %v459_v19 = vld [vmem:[%s2290_s20 + $0x70] sm:$0xff]  ;;  %v460_v20 = vld [vmem:[%s2290_s20 + $0x78] sm:$0xff]  ;;  %679 = vmatpush.bf16.msra.mxu1 %v2130_v23 }
  0x12   : > { %v473_v18 = vpack.c.bf16 %v454_v17, %v453_v16  ;;  %v476_v21 = vpack.c.bf16 %v460_v20, %v459_v19  ;;  %v455_v24 = vld [vmem:[%s2290_s20 + $0x50] sm:$0xff]  ;;  %v456_v25 = vld [vmem:[%s2290_s20 + $0x58] sm:$0xff]  ;;  %v457_v27 = vld [vmem:[%s2290_s20 + $0x60] sm:$0xff] }
  0x13   : > { %v474_v26 = vpack.c.bf16 %v456_v25, %v455_v24  ;;  %v458_v28 = vld [vmem:[%s2290_s20 + $0x68] sm:$0xff]  ;;  %v2126_v33 = vld [vmem:[%s2744_s3] sm:$0xff]  ;;  %v2135_v20 = vld [vmem:[%s2745_s4 + $0x18] sm:$0xff] }
  0x14   : > { %534 = vmatpush.bf16.msra.mxu0 %v2123_v2  ;;  %2157 = vmatpush.bf16.msra.mxu2 %v2123_v2  ;;  %v475_v30 = vpack.c.bf16 %v458_v28, %v457_v27  ;;  %v2340_v35 = vld [vmem:[%s2742_s1] ss:$0 sm:$0xff]  ;;  %v2137_v13 = vld [vmem:[%s2745_s4 + $0x28] sm:$0xff]  ;;  %v2134_v24 = vld [vmem:[%s2745_s4 + $0x10] sm:$0xff] }
  0x15   : > { %680 = vmatpush.bf16.msra.mxu1 %v2129_v29 }
  0x18   : > { %535 = vmatpush.bf16.msra.mxu0 %v2122_v3  ;;  %2158 = vmatpush.bf16.msra.mxu2 %v2122_v3 }
  0x19   : > { %681 = vmatpush.bf16.msra.mxu1 %v2128_v31 }
  0x1b   : > { %1916 = vmatmul.msk.bf16.vlgmr.msra.gmra.mxu0 %vm503_vm0, %v469_v6  ;;  %1923 = vmatmul.msk.bf16.vlgmr.msra.gmra.mxu2 %vm503_vm0, %v476_v21 }
  0x1c   : > { %2159 = vmatpush.bf16.msrb.mxu2 %v2131_v22 }
  0x1d   : > { %682 = vmatpush.bf16.msra.mxu1 %v2127_v32 }
  0x20   : > { %2160 = vmatpush.bf16.msrb.mxu2 %v2130_v23 }
  0x21   : > { %683 = vmatpush.bf16.msra.mxu1 %v2126_v33 }
  0x24   : > { %2161 = vmatpush.bf16.msrb.mxu2 %v2129_v29  ;;  %v2132_v29 = vld [vmem:[%s2745_s4] sm:$0xff] }
  0x28   : > { %2162 = vmatpush.bf16.msrb.mxu2 %v2128_v31 }
  0x2b   : > { %1917 = vmatmul.msk.bf16.gmra.mxu0 %vm503_vm0, %v470_v9 }
  0x2c   : > { %2163 = vmatpush.bf16.msrb.mxu2 %v2127_v32 }
  0x30   : > { %2164 = vmatpush.bf16.msrb.mxu2 %v2126_v33 }
  0x34   : > { %825 = vmatpush.bf16.msra.mxu2 %v2137_v13 }
  0x3b   : > { %1918 = vmatmul.msk.bf16.gmra.mxu0 %vm503_vm0, %v471_v12 }
  0x4b   : > { %1919 = vmatmul.msk.bf16.gmra.mxu0 %vm503_vm0, %v472_v15  ;;  %v2136_v15 = vld [vmem:[%s2745_s4 + $0x20] sm:$0xff] }
  0x4c   : > { %826 = vmatpush.bf16.msra.mxu2 %v2136_v15 }
  0x50   : > { %827 = vmatpush.bf16.msra.mxu2 %v2135_v20 }
  0x54   : > { %828 = vmatpush.bf16.msra.mxu2 %v2134_v24 }
  0x5b   : > { %1920 = vmatmul.msk.bf16.gmra.mxu0 %vm503_vm0, %v473_v18 }
  0x6b   : > { %1921 = vmatmul.msk.bf16.gmra.mxu0 %vm503_vm0, %v474_v26  ;;  %v2133_v26 = vld [vmem:[%s2745_s4 + $0x8] sm:$0xff] }
  0x6c   : > { %829 = vmatpush.bf16.msra.mxu2 %v2133_v26 }
  0x70   : > { %830 = vmatpush.bf16.msra.mxu2 %v2132_v29 }
  0x7b   : > { %1922 = vmatmul.msk.bf16.gmra.mxu0 %vm503_vm0, %v475_v30 }
  0x98   : > { %v537_v34 = vpop.f32.mrf.mxu0 }
  0x99   : > { %v538_v36 = vadd.f32 %v2340_v35, %v537_v34  ;;  %v2387_v34 = vld [vmem:[%s2742_s1 + $0x1] ss:$0 sm:$0xff] }
  0x9b   : > { %v577_v39 = vmax.f32 %v538_v36, 0.0 }
  0x9e   : > { %v572_v18 = vpop.f32.mrf.mxu2 }
  0x9f   : > { %v573_v27 = vadd.f32 %v2340_v35, %v572_v18 }
  0xa0   : > { %v539_v37 = vpop.f32.mrf.mxu0 }
  0xa1   : > { %v540_v38 = vadd.f32 %v2340_v35, %v539_v37  ;;  %v591_v30 = vmax.f32 %v573_v27, 0.0 }
  0xa3   : > { %v578_v40 = vmax.f32 %v540_v38, 0.0 }
  0xa5   : > { %v605_v41 = vpack.c.bf16 %v578_v40, %v577_v39 }
  0xa6   : > { %v574_v25 = vpop.f32.mrf.mxu2 }
  0xa7   : > { %1948 = vmatmul.msk.bf16.vlgmr.msra.gmra.mxu1 %vm651_vm1, %v605_v41  ;;  %v575_v28 = vadd.f32 %v2340_v35, %v574_v25 }
  0xa8   : > { %v542_v42 = vpop.f32.mrf.mxu0 }
  0xa9   : > { %v543_v43 = vadd.f32 %v2340_v35, %v542_v42  ;;  %v592_v31 = vmax.f32 %v575_v28, 0.0 }
  0xab   : > { %v579_v46 = vmax.f32 %v543_v43, 0.0  ;;  %v612_v32 = vpack.c.bf16 %v592_v31, %v591_v30  ;;  %v2425_v30 = vld [vmem:[%s2742_s1 + $0x2] ss:$0 sm:$0xff] }
  0xb0   : > { %v544_v44 = vpop.f32.mrf.mxu0 }
  0xb1   : > { %v545_v45 = vadd.f32 %v2340_v35, %v544_v44 }
  0xb3   : > { %v580_v47 = vmax.f32 %v545_v45, 0.0 }
  0xb5   : > { %v606_v48 = vpack.c.bf16 %v580_v47, %v579_v46 }
  0xb7   : > { %1949 = vmatmul.msk.bf16.gmra.mxu1 %vm651_vm1, %v606_v48 }
  0xb8   : > { %v547_v49 = vpop.f32.mrf.mxu0 }
  0xb9   : > { %v548_v50 = vadd.f32 %v2340_v35, %v547_v49 }
  0xbb   : > { %v581_v53 = vmax.f32 %v548_v50, 0.0 }
  0xc0   : > { %v549_v51 = vpop.f32.mrf.mxu0 }
  0xc1   : > { %v550_v52 = vadd.f32 %v2340_v35, %v549_v51 }
  0xc3   : > { %v582_v54 = vmax.f32 %v550_v52, 0.0 }
  0xc5   : > { %v607_v55 = vpack.c.bf16 %v582_v54, %v581_v53 }
  0xc7   : > { %1950 = vmatmul.msk.bf16.gmra.mxu1 %vm651_vm1, %v607_v55 }
  0xc8   : > { %v552_v56 = vpop.f32.mrf.mxu0 }
  0xc9   : > { %v553_v57 = vadd.f32 %v2340_v35, %v552_v56 }
  0xcb   : > { %v583_v60 = vmax.f32 %v553_v57, 0.0  ;;  %v2139_v57 = vld [vmem:[%s2746_s5 + $0x8] sm:$0xff] }
  0xd0   : > { %v554_v58 = vpop.f32.mrf.mxu0 }
  0xd1   : > { %v555_v59 = vadd.f32 %v2340_v35, %v554_v58 }
  0xd3   : > { %v584_v61 = vmax.f32 %v555_v59, 0.0 }
  0xd5   : > { %v608_v62 = vpack.c.bf16 %v584_v61, %v583_v60 }
  0xd7   : > { %1951 = vmatmul.msk.bf16.gmra.mxu1 %vm651_vm1, %v608_v62 }
  0xd8   : > { %v557_v63 = vpop.f32.mrf.mxu0 }
  0xd9   : > { %v558_v0 = vadd.f32 %v2340_v35, %v557_v63 }
  0xdb   : > { %v585_v3 = vmax.f32 %v558_v0, 0.0 }
  0xe0   : > { %v559_v1 = vpop.f32.mrf.mxu0 }
  0xe1   : > { %v560_v2 = vadd.f32 %v2340_v35, %v559_v1 }
  0xe3   : > { %v586_v4 = vmax.f32 %v560_v2, 0.0 }
  0xe5   : > { %v609_v5 = vpack.c.bf16 %v586_v4, %v585_v3 }
  0xe7   : > { %1952 = vmatmul.msk.bf16.gmra.mxu1 %vm651_vm1, %v609_v5 }
  0xe8   : > { %v562_v6 = vpop.f32.mrf.mxu0 }
  0xe9   : > { %v563_v7 = vadd.f32 %v2340_v35, %v562_v6 }
  0xeb   : > { %v587_v10 = vmax.f32 %v563_v7, 0.0 }
  0xf0   : > { %v564_v8 = vpop.f32.mrf.mxu0 }
  0xf1   : > { %v565_v9 = vadd.f32 %v2340_v35, %v564_v8 }
  0xf3   : > { %v588_v11 = vmax.f32 %v565_v9, 0.0 }
  0xf5   : > { %v610_v12 = vpack.c.bf16 %v588_v11, %v587_v10  ;;  %v2138_v11 = vld [vmem:[%s2746_s5] sm:$0xff] }
  0xf7   : > { %1953 = vmatmul.msk.bf16.gmra.mxu1 %vm651_vm1, %v610_v12 }
  0xf8   : > { %v567_v14 = vpop.f32.mrf.mxu0 }
  0xf9   : > { %v568_v16 = vadd.f32 %v2340_v35, %v567_v14 }
  0xfb   : > { %v589_v21 = vmax.f32 %v568_v16, 0.0 }
 0x100   : > { %v569_v17 = vpop.f32.mrf.mxu0 }
 0x101   : > { %v570_v19 = vadd.f32 %v2340_v35, %v569_v17  ;;  %v2140_v35 = vld [vmem:[%s2746_s5 + $0x10] sm:$0xff] }
 0x102   : > { %2165 = vmatpush.bf16.msra.mxu3 %v2140_v35 }
 0x103   : > { %v590_v22 = vmax.f32 %v570_v19, 0.0 }
 0x105   : > { %v611_v23 = vpack.c.bf16 %v590_v22, %v589_v21 }
 0x106   : > { %2166 = vmatpush.bf16.msra.mxu3 %v2139_v57 }
 0x107   : > { %1954 = vmatmul.msk.bf16.vlgmr.msrb.gmra.mxu2 %vm651_vm1, %v611_v23 }
 0x108   : > { %952 = vmatpush.bf16.msrb.mxu2 %v2140_v35 }
 0x10a   : > { %2167 = vmatpush.bf16.msra.mxu3 %v2138_v11 }
 0x10c   : > { %953 = vmatpush.bf16.msrb.mxu2 %v2139_v57 }
 0x110   : > { %954 = vmatpush.bf16.msrb.mxu2 %v2138_v11 }
 0x117   : > { %1955 = vmatmul.msk.bf16.gmra.mxu2 %vm651_vm1, %v612_v32 }
 0x124   : > { %v685_v33 = vpop.f32.mrf.mxu1 }
 0x125   : > { %v686_v36 = vadd.f32 %v2387_v34, %v685_v33 }
 0x127   : > { %v725_v39 = vmax.f32 %v686_v36, 0.0 }
 0x12c   : > { %v687_v37 = vpop.f32.mrf.mxu1 }
 0x12d   : > { %v688_v38 = vadd.f32 %v2387_v34, %v687_v37 }
 0x12f   : > { %v726_v40 = vmax.f32 %v688_v38, 0.0  ;;  %v2142_v38 = vld [vmem:[%s2747_s6 + $0x8] sm:$0xff] }
 0x130   : > { %1069 = vmatpush.bf16.msrb.mxu3 %v2142_v38 }
 0x131   : > { %v753_v41 = vpack.c.bf16 %v726_v40, %v725_v39 }
 0x133   : > { %1980 = vmatmul.msk.bf16.vlgmr.msra.gmra.mxu2 %vm651_vm1, %v753_v41 }
 0x134   : > { %v690_v42 = vpop.f32.mrf.mxu1 }
 0x135   : > { %v691_v43 = vadd.f32 %v2387_v34, %v690_v42 }
 0x137   : > { %v727_v46 = vmax.f32 %v691_v43, 0.0 }
 0x13c   : > { %v692_v44 = vpop.f32.mrf.mxu1 }
 0x13d   : > { %v693_v45 = vadd.f32 %v2387_v34, %v692_v44 }
 0x13f   : > { %v728_v47 = vmax.f32 %v693_v45, 0.0 }
 0x141   : > { %v754_v48 = vpack.c.bf16 %v728_v47, %v727_v46 }
 0x143   : > { %1981 = vmatmul.msk.bf16.gmra.mxu2 %vm651_vm1, %v754_v48 }
 0x144   : > { %v695_v49 = vpop.f32.mrf.mxu1 }
 0x145   : > { %v696_v50 = vadd.f32 %v2387_v34, %v695_v49 }
 0x147   : > { %v729_v53 = vmax.f32 %v696_v50, 0.0 }
 0x14c   : > { %v697_v51 = vpop.f32.mrf.mxu1 }
 0x14d   : > { %v698_v52 = vadd.f32 %v2387_v34, %v697_v51 }
 0x14f   : > { %v730_v54 = vmax.f32 %v698_v52, 0.0 }
 0x151   : > { %v755_v55 = vpack.c.bf16 %v730_v54, %v729_v53 }
 0x153   : > { %1982 = vmatmul.msk.bf16.gmra.mxu2 %vm651_vm1, %v755_v55 }
 0x154   : > { %v700_v56 = vpop.f32.mrf.mxu1 }
 0x155   : > { %v701_v58 = vadd.f32 %v2387_v34, %v700_v56 }
 0x157   : > { %v731_v61 = vmax.f32 %v701_v58, 0.0 }
 0x15c   : > { %v702_v59 = vpop.f32.mrf.mxu1 }
 0x15d   : > { %v703_v60 = vadd.f32 %v2387_v34, %v702_v59 }
 0x15f   : > { %v732_v62 = vmax.f32 %v703_v60, 0.0 }
 0x161   : > { %v756_v63 = vpack.c.bf16 %v732_v62, %v731_v61 }
 0x163   : > { %1983 = vmatmul.msk.bf16.gmra.mxu2 %vm651_vm1, %v756_v63 }
 0x164   : > { %v705_v0 = vpop.f32.mrf.mxu1 }
 0x165   : > { %v706_v1 = vadd.f32 %v2387_v34, %v705_v0 }
 0x167   : > { %v733_v4 = vmax.f32 %v706_v1, 0.0 }
 0x16c   : > { %v707_v2 = vpop.f32.mrf.mxu1 }
 0x16d   : > { %v708_v3 = vadd.f32 %v2387_v34, %v707_v2 }
 0x16f   : > { %v734_v5 = vmax.f32 %v708_v3, 0.0  ;;  %v2141_v3 = vld [vmem:[%s2747_s6] sm:$0xff] }
 0x170   : > { %1070 = vmatpush.bf16.msrb.mxu3 %v2141_v3 }
 0x171   : > { %v757_v6 = vpack.c.bf16 %v734_v5, %v733_v4 }
 0x173   : > { %1984 = vmatmul.msk.bf16.gmra.mxu2 %vm651_vm1, %v757_v6 }
 0x174   : > { %v710_v7 = vpop.f32.mrf.mxu1 }
 0x175   : > { %v711_v8 = vadd.f32 %v2387_v34, %v710_v7 }
 0x177   : > { %v735_v12 = vmax.f32 %v711_v8, 0.0 }
 0x17c   : > { %v712_v9 = vpop.f32.mrf.mxu1 }
 0x17d   : > { %v713_v10 = vadd.f32 %v2387_v34, %v712_v9 }
 0x17f   : > { %v736_v13 = vmax.f32 %v713_v10, 0.0 }
 0x181   : > { %v758_v14 = vpack.c.bf16 %v736_v13, %v735_v12 }
 0x183   : > { %1985 = vmatmul.msk.bf16.gmra.mxu2 %vm651_vm1, %v758_v14 }
 0x18a   : > { %v715_v15 = vpop.f32.mrf.mxu2 }
 0x18b   : > { %v716_v16 = vadd.f32 %v2387_v34, %v715_v15 }
 0x18d   : > { %v737_v19 = vmax.f32 %v716_v16, 0.0 }
 0x192   : > { %v717_v17 = vpop.f32.mrf.mxu2 }
 0x193   : > { %v718_v18 = vadd.f32 %v2387_v34, %v717_v17 }
 0x195   : > { %v738_v20 = vmax.f32 %v718_v18, 0.0 }
 0x197   : > { %v759_v21 = vpack.c.bf16 %v738_v20, %v737_v19 }
 0x199   : > { %1986 = vmatmul.msk.bf16.gmra.mxu2 %vm651_vm1, %v759_v21 }
 0x19a   : > { %v720_v22 = vpop.f32.mrf.mxu2 }
 0x19b   : > { %v721_v23 = vadd.f32 %v2387_v34, %v720_v22 }
 0x19d   : > { %v739_v26 = vmax.f32 %v721_v23, 0.0 }
 0x1a2   : > { %v722_v24 = vpop.f32.mrf.mxu2 }
 0x1a3   : > { %v723_v25 = vadd.f32 %v2387_v34, %v722_v24 }
 0x1a5   : > { %v740_v27 = vmax.f32 %v723_v25, 0.0  ;;  %v2460_v25 = vld [vmem:[%s2742_s1 + $0x3] ss:$0 sm:$0xff] }
 0x1a7   : > { %v760_v28 = vpack.c.bf16 %v740_v27, %v739_v26 }
 0x1a9   : > { %1987 = vmatmul.msk.bf16.gmra.mxu2 %vm651_vm1, %v760_v28 }
 0x1b6   : > { %v832_v29 = vpop.f32.mrf.mxu2 }
 0x1b7   : > { %v833_v31 = vadd.f32 %v2425_v30, %v832_v29 }
 0x1b9   : > { %v872_v35 = vmax.f32 %v833_v31, 0.0 }
 0x1be   : > { %v834_v32 = vpop.f32.mrf.mxu2 }
 0x1bf   : > { %v835_v33 = vadd.f32 %v2425_v30, %v834_v32 }
 0x1c1   : > { %v873_v36 = vmax.f32 %v835_v33, 0.0  ;;  %v2144_v33 = vld [vmem:[%s2748_s7 + $0x8] sm:$0xff] }
 0x1c2   : > { %1184 = vmatpush.bf16.msrb.mxu0 %v2144_v33 }
 0x1c3   : > { %v894_v34 = vpack.c.bf16 %v873_v36, %v872_v35 }
 0x1c5   : > { %2000 = vmatmul.msk.bf16.vlgmr.msrb.gmra.mxu2 %vm922_vm2, %v894_v34 }
 0x1c6   : > { %v837_v37 = vpop.f32.mrf.mxu2 }
 0x1c7   : > { %v838_v39 = vadd.f32 %v2425_v30, %v837_v37 }
 0x1c9   : > { %v874_v42 = vmax.f32 %v838_v39, 0.0 }
 0x1ce   : > { %v839_v40 = vpop.f32.mrf.mxu2 }
 0x1cf   : > { %v840_v41 = vadd.f32 %v2425_v30, %v839_v40 }
 0x1d1   : > { %v875_v43 = vmax.f32 %v840_v41, 0.0 }
 0x1d3   : > { %v895_v44 = vpack.c.bf16 %v875_v43, %v874_v42 }
 0x1d5   : > { %2001 = vmatmul.msk.bf16.vlgmr.msra.gmra.mxu3 %vm922_vm2, %v895_v44 }
 0x1d6   : > { %v842_v45 = vpop.f32.mrf.mxu2 }
 0x1d7   : > { %v843_v46 = vadd.f32 %v2425_v30, %v842_v45 }
 0x1d9   : > { %v876_v49 = vmax.f32 %v843_v46, 0.0 }
 0x1de   : > { %v844_v47 = vpop.f32.mrf.mxu2 }
 0x1df   : > { %v845_v48 = vadd.f32 %v2425_v30, %v844_v47 }
 0x1e1   : > { %v877_v50 = vmax.f32 %v845_v48, 0.0 }
 0x1e3   : > { %v896_v51 = vpack.c.bf16 %v877_v50, %v876_v49 }
 0x1e5   : > { %2002 = vmatmul.msk.bf16.gmra.mxu3 %vm922_vm2, %v896_v51 }
 0x1e6   : > { %v847_v52 = vpop.f32.mrf.mxu2 }
 0x1e7   : > { %v848_v53 = vadd.f32 %v2425_v30, %v847_v52 }
 0x1e9   : > { %v878_v56 = vmax.f32 %v848_v53, 0.0 }
 0x1ee   : > { %v849_v54 = vpop.f32.mrf.mxu2 }
 0x1ef   : > { %v850_v55 = vadd.f32 %v2425_v30, %v849_v54 }
 0x1f1   : > { %v879_v57 = vmax.f32 %v850_v55, 0.0 }
 0x1f3   : > { %v897_v58 = vpack.c.bf16 %v879_v57, %v878_v56 }
 0x1f5   : > { %2003 = vmatmul.msk.bf16.gmra.mxu3 %vm922_vm2, %v897_v58 }
 0x1f6   : > { %v852_v59 = vpop.f32.mrf.mxu2 }
 0x1f7   : > { %v853_v60 = vadd.f32 %v2425_v30, %v852_v59 }
 0x1f9   : > { %v880_v63 = vmax.f32 %v853_v60, 0.0 }
 0x1fe   : > { %v854_v61 = vpop.f32.mrf.mxu2 }
 0x1ff   : > { %v855_v62 = vadd.f32 %v2425_v30, %v854_v61 }
 0x201   : > { %v881_v0 = vmax.f32 %v855_v62, 0.0  ;;  %v2143_v62 = vld [vmem:[%s2748_s7] sm:$0xff] }
 0x202   : > { %1185 = vmatpush.bf16.msrb.mxu0 %v2143_v62 }
 0x203   : > { %v898_v1 = vpack.c.bf16 %v881_v0, %v880_v63 }
 0x205   : > { %2004 = vmatmul.msk.bf16.gmra.mxu3 %vm922_vm2, %v898_v1 }
 0x206   : > { %v857_v2 = vpop.f32.mrf.mxu2 }
 0x207   : > { %v858_v4 = vadd.f32 %v2425_v30, %v857_v2 }
 0x209   : > { %v882_v7 = vmax.f32 %v858_v4, 0.0 }
 0x20e   : > { %v859_v5 = vpop.f32.mrf.mxu2 }
 0x20f   : > { %v860_v6 = vadd.f32 %v2425_v30, %v859_v5 }
 0x211   : > { %v883_v8 = vmax.f32 %v860_v6, 0.0 }
 0x213   : > { %v899_v9 = vpack.c.bf16 %v883_v8, %v882_v7 }
 0x215   : > { %2005 = vmatmul.msk.bf16.gmra.mxu3 %vm922_vm2, %v899_v9 }
 0x21c   : > { %v862_v10 = vpop.f32.mrf.mxu2 }
 0x21d   : > { %v863_v11 = vadd.f32 %v2425_v30, %v862_v10 }
 0x21f   : > { %v884_v14 = vmax.f32 %v863_v11, 0.0 }
 0x224   : > { %v864_v12 = vpop.f32.mrf.mxu2 }
 0x225   : > { %v865_v13 = vadd.f32 %v2425_v30, %v864_v12 }
 0x227   : > { %v885_v15 = vmax.f32 %v865_v13, 0.0 }
 0x229   : > { %v900_v16 = vpack.c.bf16 %v885_v15, %v884_v14 }
 0x22b   : > { %2006 = vmatmul.msk.bf16.gmra.mxu3 %vm922_vm2, %v900_v16 }
 0x22c   : > { %v867_v17 = vpop.f32.mrf.mxu2 }
 0x22d   : > { %v868_v18 = vadd.f32 %v2425_v30, %v867_v17 }
 0x22f   : > { %v886_v21 = vmax.f32 %v868_v18, 0.0 }
 0x234   : > { %v869_v19 = vpop.f32.mrf.mxu2 }
 0x235   : > { %v870_v20 = vadd.f32 %v2425_v30, %v869_v19 }
 0x237   : > { %v887_v22 = vmax.f32 %v870_v20, 0.0  ;;  %v2495_v20 = vld [vmem:[%s2742_s1 + $0x4] ss:$0 sm:$0xff] }
 0x239   : > { %v901_v23 = vpack.c.bf16 %v887_v22, %v886_v21 }
 0x23b   : > { %2007 = vmatmul.msk.bf16.gmra.mxu3 %vm922_vm2, %v901_v23 }
 0x248   : > { %v956_v24 = vpop.f32.mrf.mxu2 }
 0x249   : > { %v957_v26 = vadd.f32 %v2460_v25, %v956_v24 }
 0x24b   : > { %v996_v29 = vmax.f32 %v957_v26, 0.0 }
 0x250   : > { %v958_v27 = vpop.f32.mrf.mxu2 }
 0x251   : > { %v959_v28 = vadd.f32 %v2460_v25, %v958_v27 }
 0x253   : > { %v997_v31 = vmax.f32 %v959_v28, 0.0 }
 0x255   : > { %v1016_v30 = vpack.c.bf16 %v997_v31, %v996_v29 }
 0x257   : > { %2016 = vmatmul.msk.bf16.vlgmr.msrb.gmra.mxu3 %vm1038_vm3, %v1016_v30 }
 0x258   : > { %v961_v32 = vpop.f32.mrf.mxu3 }
 0x259   : > { %v962_v35 = vadd.f32 %v2460_v25, %v961_v32 }
 0x25b   : > { %v998_v37 = vmax.f32 %v962_v35, 0.0 }
 0x260   : > { %v963_v36 = vpop.f32.mrf.mxu3 }
 0x261   : > { %v964_v34 = vadd.f32 %v2460_v25, %v963_v36  ;;  %v2146_v36 = vld [vmem:[%s2749_s8 + $0x8] sm:$0xff] }
 0x262   : > { %1299 = vmatpush.bf16.msrb.mxu1 %v2146_v36 }
 0x263   : > { %v999_v38 = vmax.f32 %v964_v34, 0.0 }
 0x265   : > { %v1017_v39 = vpack.c.bf16 %v999_v38, %v998_v37 }
 0x267   : > { %2017 = vmatmul.msk.bf16.gmra.mxu3 %vm1038_vm3, %v1017_v39 }
 0x268   : > { %v966_v40 = vpop.f32.mrf.mxu3 }
 0x269   : > { %v967_v41 = vadd.f32 %v2460_v25, %v966_v40 }
 0x26b   : > { %v1000_v44 = vmax.f32 %v967_v41, 0.0 }
 0x270   : > { %v968_v42 = vpop.f32.mrf.mxu3 }
 0x271   : > { %v969_v43 = vadd.f32 %v2460_v25, %v968_v42 }
 0x273   : > { %v1001_v45 = vmax.f32 %v969_v43, 0.0 }
 0x275   : > { %v1018_v46 = vpack.c.bf16 %v1001_v45, %v1000_v44 }
 0x277   : > { %2018 = vmatmul.msk.bf16.gmra.mxu3 %vm1038_vm3, %v1018_v46 }
 0x278   : > { %v971_v47 = vpop.f32.mrf.mxu3 }
 0x279   : > { %v972_v48 = vadd.f32 %v2460_v25, %v971_v47 }
 0x27b   : > { %v1002_v51 = vmax.f32 %v972_v48, 0.0 }
 0x280   : > { %v973_v49 = vpop.f32.mrf.mxu3 }
 0x281   : > { %v974_v50 = vadd.f32 %v2460_v25, %v973_v49 }
 0x283   : > { %v1003_v52 = vmax.f32 %v974_v50, 0.0 }
 0x285   : > { %v1019_v53 = vpack.c.bf16 %v1003_v52, %v1002_v51 }
 0x287   : > { %2019 = vmatmul.msk.bf16.gmra.mxu3 %vm1038_vm3, %v1019_v53 }
 0x288   : > { %v976_v54 = vpop.f32.mrf.mxu3 }
 0x289   : > { %v977_v55 = vadd.f32 %v2460_v25, %v976_v54 }
 0x28b   : > { %v1004_v58 = vmax.f32 %v977_v55, 0.0 }
 0x290   : > { %v978_v56 = vpop.f32.mrf.mxu3 }
 0x291   : > { %v979_v57 = vadd.f32 %v2460_v25, %v978_v56 }
 0x293   : > { %v1005_v59 = vmax.f32 %v979_v57, 0.0  ;;  %v2145_v57 = vld [vmem:[%s2749_s8] sm:$0xff] }
 0x294   : > { %1300 = vmatpush.bf16.msrb.mxu1 %v2145_v57 }
 0x295   : > { %v1020_v60 = vpack.c.bf16 %v1005_v59, %v1004_v58 }
 0x297   : > { %2020 = vmatmul.msk.bf16.gmra.mxu3 %vm1038_vm3, %v1020_v60 }
 0x298   : > { %v981_v61 = vpop.f32.mrf.mxu3 }
 0x299   : > { %v982_v63 = vadd.f32 %v2460_v25, %v981_v61 }
 0x29b   : > { %v1006_v2 = vmax.f32 %v982_v63, 0.0 }
 0x2a0   : > { %v983_v0 = vpop.f32.mrf.mxu3 }
 0x2a1   : > { %v984_v1 = vadd.f32 %v2460_v25, %v983_v0 }
 0x2a3   : > { %v1007_v3 = vmax.f32 %v984_v1, 0.0 }
 0x2a5   : > { %v1021_v4 = vpack.c.bf16 %v1007_v3, %v1006_v2 }
 0x2a7   : > { %2021 = vmatmul.msk.bf16.gmra.mxu3 %vm1038_vm3, %v1021_v4 }
 0x2ae   : > { %v986_v5 = vpop.f32.mrf.mxu3 }
 0x2af   : > { %v987_v6 = vadd.f32 %v2460_v25, %v986_v5 }
 0x2b1   : > { %v1008_v9 = vmax.f32 %v987_v6, 0.0 }
 0x2b6   : > { %v988_v7 = vpop.f32.mrf.mxu3 }
 0x2b7   : > { %v989_v8 = vadd.f32 %v2460_v25, %v988_v7 }
 0x2b9   : > { %v1009_v10 = vmax.f32 %v989_v8, 0.0 }
 0x2bb   : > { %v1022_v11 = vpack.c.bf16 %v1009_v10, %v1008_v9 }
 0x2bd   : > { %2022 = vmatmul.msk.bf16.gmra.mxu3 %vm1038_vm3, %v1022_v11 }
 0x2be   : > { %v991_v12 = vpop.f32.mrf.mxu3 }
 0x2bf   : > { %v992_v13 = vadd.f32 %v2460_v25, %v991_v12 }
 0x2c1   : > { %v1010_v16 = vmax.f32 %v992_v13, 0.0 }
 0x2c6   : > { %v993_v14 = vpop.f32.mrf.mxu3 }
 0x2c7   : > { %v994_v15 = vadd.f32 %v2460_v25, %v993_v14 }
 0x2c9   : > { %v1011_v17 = vmax.f32 %v994_v15, 0.0  ;;  %v2530_v15 = vld [vmem:[%s2742_s1 + $0x5] ss:$0 sm:$0xff] }
 0x2cb   : > { %v1023_v18 = vpack.c.bf16 %v1011_v17, %v1010_v16 }
 0x2cd   : > { %2023 = vmatmul.msk.bf16.gmra.mxu3 %vm1038_vm3, %v1023_v18 }
 0x2da   : > { %v1072_v19 = vpop.f32.mrf.mxu3 }
 0x2db   : > { %v1073_v21 = vadd.f32 %v2495_v20, %v1072_v19 }
 0x2dd   : > { %v1112_v24 = vmax.f32 %v1073_v21, 0.0 }
 0x2e2   : > { %v1074_v22 = vpop.f32.mrf.mxu3 }
 0x2e3   : > { %v1075_v23 = vadd.f32 %v2495_v20, %v1074_v22 }
 0x2e5   : > { %v1113_v26 = vmax.f32 %v1075_v23, 0.0 }
 0x2e7   : > { %v1132_v27 = vpack.c.bf16 %v1113_v26, %v1112_v24 }
 0x2e9   : > { %2032 = vmatmul.msk.bf16.vlgmr.msrb.gmra.mxu0 %vm1038_vm3, %v1132_v27 }
 0x2ea   : > { %v1077_v25 = vpop.f32.mrf.mxu3 }
 0x2eb   : > { %v1078_v28 = vadd.f32 %v2495_v20, %v1077_v25 }
 0x2ed   : > { %v1114_v30 = vmax.f32 %v1078_v28, 0.0 }
 0x2f2   : > { %v1079_v29 = vpop.f32.mrf.mxu3 }
 0x2f3   : > { %v1080_v31 = vadd.f32 %v2495_v20, %v1079_v29 }
 0x2f5   : > { %v1115_v32 = vmax.f32 %v1080_v31, 0.0 }
 0x2f7   : > { %v1133_v33 = vpack.c.bf16 %v1115_v32, %v1114_v30 }
 0x2f9   : > { %2033 = vmatmul.msk.bf16.gmra.mxu0 %vm1038_vm3, %v1133_v33 }
 0x2fa   : > { %v1082_v35 = vpop.f32.mrf.mxu3 }
 0x2fb   : > { %v1083_v34 = vadd.f32 %v2495_v20, %v1082_v35 }
 0x2fd   : > { %v1116_v39 = vmax.f32 %v1083_v34, 0.0 }
 0x302   : > { %v1084_v37 = vpop.f32.mrf.mxu3 }
 0x303   : > { %v1085_v38 = vadd.f32 %v2495_v20, %v1084_v37 }
 0x305   : > { %v1117_v40 = vmax.f32 %v1085_v38, 0.0 }
 0x307   : > { %v1134_v41 = vpack.c.bf16 %v1117_v40, %v1116_v39 }
 0x309   : > { %2034 = vmatmul.msk.bf16.gmra.mxu0 %vm1038_vm3, %v1134_v41 }
 0x30a   : > { %v1087_v42 = vpop.f32.mrf.mxu3 }
 0x30b   : > { %v1088_v43 = vadd.f32 %v2495_v20, %v1087_v42 }
 0x30d   : > { %v1118_v46 = vmax.f32 %v1088_v43, 0.0 }
 0x312   : > { %v1089_v44 = vpop.f32.mrf.mxu3 }
 0x313   : > { %v1090_v45 = vadd.f32 %v2495_v20, %v1089_v44 }
 0x315   : > { %v1119_v47 = vmax.f32 %v1090_v45, 0.0 }
 0x317   : > { %v1135_v48 = vpack.c.bf16 %v1119_v47, %v1118_v46 }
 0x319   : > { %2035 = vmatmul.msk.bf16.gmra.mxu0 %vm1038_vm3, %v1135_v48 }
 0x31a   : > { %v1092_v49 = vpop.f32.mrf.mxu3 }
 0x31b   : > { %v1093_v50 = vadd.f32 %v2495_v20, %v1092_v49 }
 0x31d   : > { %v1120_v53 = vmax.f32 %v1093_v50, 0.0 }
 0x322   : > { %v1094_v51 = vpop.f32.mrf.mxu3 }
 0x323   : > { %v1095_v52 = vadd.f32 %v2495_v20, %v1094_v51 }
 0x325   : > { %v1121_v54 = vmax.f32 %v1095_v52, 0.0 }
 0x327   : > { %v1136_v55 = vpack.c.bf16 %v1121_v54, %v1120_v53 }
 0x329   : > { %2036 = vmatmul.msk.bf16.gmra.mxu0 %vm1038_vm3, %v1136_v55 }
 0x32a   : > { %v1097_v56 = vpop.f32.mrf.mxu3 }
 0x32b   : > { %v1098_v58 = vadd.f32 %v2495_v20, %v1097_v56 }
 0x32d   : > { %v1122_v61 = vmax.f32 %v1098_v58, 0.0 }
 0x332   : > { %v1099_v59 = vpop.f32.mrf.mxu3 }
 0x333   : > { %v1100_v60 = vadd.f32 %v2495_v20, %v1099_v59 }
 0x335   : > { %v1123_v62 = vmax.f32 %v1100_v60, 0.0 }
 0x337   : > { %v1137_v63 = vpack.c.bf16 %v1123_v62, %v1122_v61  ;;  %v2148_v61 = vld [vmem:[%s2750_s9 + $0x8] sm:$0xff] }
 0x338   : > { %1414 = vmatpush.bf16.msra.mxu2 %v2148_v61 }
 0x339   : > { %2037 = vmatmul.msk.bf16.gmra.mxu0 %vm1038_vm3, %v1137_v63 }
 0x340   : > { %v1102_v0 = vpop.f32.mrf.mxu3 }
 0x341   : > { %v1103_v1 = vadd.f32 %v2495_v20, %v1102_v0 }
 0x343   : > { %v1124_v4 = vmax.f32 %v1103_v1, 0.0 }
 0x348   : > { %v1104_v2 = vpop.f32.mrf.mxu3 }
 0x349   : > { %v1105_v3 = vadd.f32 %v2495_v20, %v1104_v2  ;;  %v2147_v2 = vld [vmem:[%s2750_s9] sm:$0xff] }
 0x34a   : > { %1415 = vmatpush.bf16.msra.mxu2 %v2147_v2 }
 0x34b   : > { %v1125_v5 = vmax.f32 %v1105_v3, 0.0 }
 0x34d   : > { %v1138_v6 = vpack.c.bf16 %v1125_v5, %v1124_v4 }
 0x34f   : > { %2038 = vmatmul.msk.bf16.gmra.mxu0 %vm1038_vm3, %v1138_v6 }
 0x350   : > { %v1107_v7 = vpop.f32.mrf.mxu3 }
 0x351   : > { %v1108_v8 = vadd.f32 %v2495_v20, %v1107_v7 }
 0x353   : > { %v1126_v11 = vmax.f32 %v1108_v8, 0.0 }
 0x358   : > { %v1109_v9 = vpop.f32.mrf.mxu3 }
 0x359   : > { %v1110_v10 = vadd.f32 %v2495_v20, %v1109_v9 }
 0x35b   : > { %v1127_v12 = vmax.f32 %v1110_v10, 0.0  ;;  %v2565_v10 = vld [vmem:[%s2742_s1 + $0x6] ss:$0 sm:$0xff] }
 0x35d   : > { %v1139_v13 = vpack.c.bf16 %v1127_v12, %v1126_v11  ;;  %v2150_v11 = vld [vmem:[%s2751_s10 + $0x8] sm:$0xff] }
 0x35e   : > { %1529 = vmatpush.bf16.msra.mxu3 %v2150_v11 }
 0x35f   : > { %2039 = vmatmul.msk.bf16.gmra.mxu0 %vm1038_vm3, %v1139_v13 }
 0x366   : > { %v1187_v14 = vpop.f32.mrf.mxu0 }
 0x367   : > { %v1188_v16 = vadd.f32 %v2530_v15, %v1187_v14 }
 0x369   : > { %v1227_v19 = vmax.f32 %v1188_v16, 0.0 }
 0x36e   : > { %v1189_v17 = vpop.f32.mrf.mxu0 }
 0x36f   : > { %v1190_v18 = vadd.f32 %v2530_v15, %v1189_v17 }
 0x371   : > { %v1228_v21 = vmax.f32 %v1190_v18, 0.0 }
 0x373   : > { %v1247_v22 = vpack.c.bf16 %v1228_v21, %v1227_v19 }
 0x375   : > { %2048 = vmatmul.msk.bf16.vlgmr.msrb.gmra.mxu1 %vm1038_vm3, %v1247_v22 }
 0x376   : > { %v1192_v20 = vpop.f32.mrf.mxu0 }
 0x377   : > { %v1193_v23 = vadd.f32 %v2530_v15, %v1192_v20 }
 0x379   : > { %v1229_v27 = vmax.f32 %v1193_v23, 0.0 }
 0x37e   : > { %v1194_v24 = vpop.f32.mrf.mxu0 }
 0x37f   : > { %v1195_v26 = vadd.f32 %v2530_v15, %v1194_v24 }
 0x381   : > { %v1230_v25 = vmax.f32 %v1195_v26, 0.0 }
 0x383   : > { %v1248_v28 = vpack.c.bf16 %v1230_v25, %v1229_v27 }
 0x385   : > { %2049 = vmatmul.msk.bf16.gmra.mxu1 %vm1038_vm3, %v1248_v28 }
 0x386   : > { %v1197_v29 = vpop.f32.mrf.mxu0 }
 0x387   : > { %v1198_v31 = vadd.f32 %v2530_v15, %v1197_v29 }
 0x389   : > { %v1231_v33 = vmax.f32 %v1198_v31, 0.0 }
 0x38e   : > { %v1199_v30 = vpop.f32.mrf.mxu0 }
 0x38f   : > { %v1200_v32 = vadd.f32 %v2530_v15, %v1199_v30 }
 0x391   : > { %v1232_v35 = vmax.f32 %v1200_v32, 0.0 }
 0x393   : > { %v1249_v36 = vpack.c.bf16 %v1232_v35, %v1231_v33 }
 0x395   : > { %2050 = vmatmul.msk.bf16.gmra.mxu1 %vm1038_vm3, %v1249_v36 }
 0x396   : > { %v1202_v34 = vpop.f32.mrf.mxu0 }
 0x397   : > { %v1203_v37 = vadd.f32 %v2530_v15, %v1202_v34 }
 0x399   : > { %v1233_v40 = vmax.f32 %v1203_v37, 0.0 }
 0x39e   : > { %v1204_v38 = vpop.f32.mrf.mxu0 }
 0x39f   : > { %v1205_v39 = vadd.f32 %v2530_v15, %v1204_v38 }
 0x3a1   : > { %v1234_v41 = vmax.f32 %v1205_v39, 0.0 }
 0x3a3   : > { %v1250_v42 = vpack.c.bf16 %v1234_v41, %v1233_v40 }
 0x3a5   : > { %2051 = vmatmul.msk.bf16.gmra.mxu1 %vm1038_vm3, %v1250_v42 }
 0x3a6   : > { %v1207_v43 = vpop.f32.mrf.mxu0 }
 0x3a7   : > { %v1208_v44 = vadd.f32 %v2530_v15, %v1207_v43  ;;  %v2149_v43 = vld [vmem:[%s2751_s10] sm:$0xff] }
 0x3a8   : > { %1530 = vmatpush.bf16.msra.mxu3 %v2149_v43 }
 0x3a9   : > { %v1235_v47 = vmax.f32 %v1208_v44, 0.0 }
 0x3ae   : > { %v1209_v45 = vpop.f32.mrf.mxu0 }
 0x3af   : > { %v1210_v46 = vadd.f32 %v2530_v15, %v1209_v45 }
 0x3b1   : > { %v1236_v48 = vmax.f32 %v1210_v46, 0.0 }
 0x3b3   : > { %v1251_v49 = vpack.c.bf16 %v1236_v48, %v1235_v47 }
 0x3b5   : > { %2052 = vmatmul.msk.bf16.gmra.mxu1 %vm1038_vm3, %v1251_v49 }
 0x3b6   : > { %v1212_v50 = vpop.f32.mrf.mxu0 }
 0x3b7   : > { %v1213_v51 = vadd.f32 %v2530_v15, %v1212_v50 }
 0x3b9   : > { %v1237_v54 = vmax.f32 %v1213_v51, 0.0 }
 0x3be   : > { %v1214_v52 = vpop.f32.mrf.mxu0 }
 0x3bf   : > { %v1215_v53 = vadd.f32 %v2530_v15, %v1214_v52 }
 0x3c1   : > { %v1238_v55 = vmax.f32 %v1215_v53, 0.0 }
 0x3c3   : > { %v1252_v56 = vpack.c.bf16 %v1238_v55, %v1237_v54 }
 0x3c5   : > { %2053 = vmatmul.msk.bf16.gmra.mxu1 %vm1038_vm3, %v1252_v56 }
 0x3cc   : > { %v1217_v57 = vpop.f32.mrf.mxu0 }
 0x3cd   : > { %v1218_v58 = vadd.f32 %v2530_v15, %v1217_v57 }
 0x3cf   : > { %v1239_v62 = vmax.f32 %v1218_v58, 0.0 }
 0x3d4   : > { %v1219_v59 = vpop.f32.mrf.mxu0 }
 0x3d5   : > { %v1220_v60 = vadd.f32 %v2530_v15, %v1219_v59 }
 0x3d7   : > { %v1240_v63 = vmax.f32 %v1220_v60, 0.0 }
 0x3d9   : > { %v1253_v0 = vpack.c.bf16 %v1240_v63, %v1239_v62 }
 0x3db   : > { %2054 = vmatmul.msk.bf16.gmra.mxu1 %vm1038_vm3, %v1253_v0 }
 0x3dc   : > { %v1222_v1 = vpop.f32.mrf.mxu0 }
 0x3dd   : > { %v1223_v3 = vadd.f32 %v2530_v15, %v1222_v1 }
 0x3df   : > { %v1241_v6 = vmax.f32 %v1223_v3, 0.0 }
 0x3e4   : > { %v1224_v4 = vpop.f32.mrf.mxu0 }
 0x3e5   : > { %v1225_v5 = vadd.f32 %v2530_v15, %v1224_v4 }
 0x3e7   : > { %v1242_v7 = vmax.f32 %v1225_v5, 0.0  ;;  %v2600_v5 = vld [vmem:[%s2742_s1 + $0x7] ss:$0 sm:$0xff] }
 0x3e9   : > { %v1254_v8 = vpack.c.bf16 %v1242_v7, %v1241_v6  ;;  %v2152_v6 = vld [vmem:[%s2752_s11 + $0x8] sm:$0xff] }
 0x3ea   : > { %1644 = vmatpush.bf16.msra.mxu0 %v2152_v6 }
 0x3eb   : > { %2055 = vmatmul.msk.bf16.gmra.mxu1 %vm1038_vm3, %v1254_v8 }
 0x3f2   : > { %v1302_v9 = vpop.f32.mrf.mxu1 }
 0x3f3   : > { %v1303_v12 = vadd.f32 %v2565_v10, %v1302_v9 }
 0x3f5   : > { %v1342_v15 = vmax.f32 %v1303_v12, 0.0 }
 0x3fa   : > { %v1304_v13 = vpop.f32.mrf.mxu1 }
 0x3fb   : > { %v1305_v14 = vadd.f32 %v2565_v10, %v1304_v13 }
 0x3fd   : > { %v1343_v16 = vmax.f32 %v1305_v14, 0.0 }
 0x3ff   : > { %v1362_v17 = vpack.c.bf16 %v1343_v16, %v1342_v15 }
 0x401   : > { %2064 = vmatmul.msk.bf16.vlgmr.msra.gmra.mxu2 %vm1038_vm3, %v1362_v17 }
 0x402   : > { %v1307_v18 = vpop.f32.mrf.mxu1 }
 0x403   : > { %v1308_v19 = vadd.f32 %v2565_v10, %v1307_v18 }
 0x405   : > { %v1344_v20 = vmax.f32 %v1308_v19, 0.0 }
 0x40a   : > { %v1309_v21 = vpop.f32.mrf.mxu1 }
 0x40b   : > { %v1310_v22 = vadd.f32 %v2565_v10, %v1309_v21 }
 0x40d   : > { %v1345_v23 = vmax.f32 %v1310_v22, 0.0 }
 0x40f   : > { %v1363_v24 = vpack.c.bf16 %v1345_v23, %v1344_v20 }
 0x411   : > { %2065 = vmatmul.msk.bf16.gmra.mxu2 %vm1038_vm3, %v1363_v24 }
 0x412   : > { %v1312_v26 = vpop.f32.mrf.mxu1 }
 0x413   : > { %v1313_v27 = vadd.f32 %v2565_v10, %v1312_v26 }
 0x415   : > { %v1346_v29 = vmax.f32 %v1313_v27, 0.0 }
 0x41a   : > { %v1314_v25 = vpop.f32.mrf.mxu1 }
 0x41b   : > { %v1315_v28 = vadd.f32 %v2565_v10, %v1314_v25 }
 0x41d   : > { %v1347_v31 = vmax.f32 %v1315_v28, 0.0 }
 0x41f   : > { %v1364_v30 = vpack.c.bf16 %v1347_v31, %v1346_v29 }
 0x421   : > { %2066 = vmatmul.msk.bf16.gmra.mxu2 %vm1038_vm3, %v1364_v30 }
 0x422   : > { %v1317_v32 = vpop.f32.mrf.mxu1 }
 0x423   : > { %v1318_v33 = vadd.f32 %v2565_v10, %v1317_v32 }
 0x425   : > { %v1348_v34 = vmax.f32 %v1318_v33, 0.0 }
 0x42a   : > { %v1319_v35 = vpop.f32.mrf.mxu1 }
 0x42b   : > { %v1320_v36 = vadd.f32 %v2565_v10, %v1319_v35 }
 0x42d   : > { %v1349_v37 = vmax.f32 %v1320_v36, 0.0 }
 0x42f   : > { %v1365_v38 = vpack.c.bf16 %v1349_v37, %v1348_v34 }
 0x431   : > { %2067 = vmatmul.msk.bf16.gmra.mxu2 %vm1038_vm3, %v1365_v38  ;;  %v2151_v38 = vld [vmem:[%s2752_s11] sm:$0xff] }
 0x432   : > { %v1322_v39 = vpop.f32.mrf.mxu1  ;;  %1645 = vmatpush.bf16.msra.mxu0 %v2151_v38 }
 0x433   : > { %v1323_v40 = vadd.f32 %v2565_v10, %v1322_v39 }
 0x435   : > { %v1350_v44 = vmax.f32 %v1323_v40, 0.0 }
 0x43a   : > { %v1324_v41 = vpop.f32.mrf.mxu1 }
 0x43b   : > { %v1325_v42 = vadd.f32 %v2565_v10, %v1324_v41 }
 0x43d   : > { %v1351_v45 = vmax.f32 %v1325_v42, 0.0 }
 0x43f   : > { %v1366_v46 = vpack.c.bf16 %v1351_v45, %v1350_v44 }
 0x441   : > { %2068 = vmatmul.msk.bf16.gmra.mxu2 %vm1038_vm3, %v1366_v46 }
 0x442   : > { %v1327_v47 = vpop.f32.mrf.mxu1 }
 0x443   : > { %v1328_v48 = vadd.f32 %v2565_v10, %v1327_v47 }
 0x445   : > { %v1352_v51 = vmax.f32 %v1328_v48, 0.0 }
 0x44a   : > { %v1329_v49 = vpop.f32.mrf.mxu1 }
 0x44b   : > { %v1330_v50 = vadd.f32 %v2565_v10, %v1329_v49 }
 0x44d   : > { %v1353_v52 = vmax.f32 %v1330_v50, 0.0 }
 0x44f   : > { %v1367_v53 = vpack.c.bf16 %v1353_v52, %v1352_v51 }
 0x451   : > { %2069 = vmatmul.msk.bf16.gmra.mxu2 %vm1038_vm3, %v1367_v53 }
 0x458   : > { %v1332_v54 = vpop.f32.mrf.mxu1 }
 0x459   : > { %v1333_v55 = vadd.f32 %v2565_v10, %v1332_v54 }
 0x45b   : > { %v1354_v58 = vmax.f32 %v1333_v55, 0.0 }
 0x460   : > { %v1334_v56 = vpop.f32.mrf.mxu1 }
 0x461   : > { %v1335_v57 = vadd.f32 %v2565_v10, %v1334_v56 }
 0x463   : > { %v1355_v59 = vmax.f32 %v1335_v57, 0.0 }
 0x465   : > { %v1368_v60 = vpack.c.bf16 %v1355_v59, %v1354_v58 }
 0x467   : > { %2070 = vmatmul.msk.bf16.gmra.mxu2 %vm1038_vm3, %v1368_v60 }
 0x468   : > { %v1337_v61 = vpop.f32.mrf.mxu1 }
 0x469   : > { %v1338_v62 = vadd.f32 %v2565_v10, %v1337_v61 }
 0x46b   : > { %v1356_v1 = vmax.f32 %v1338_v62, 0.0 }
 0x470   : > { %v1339_v63 = vpop.f32.mrf.mxu1 }
 0x471   : > { %v1340_v0 = vadd.f32 %v2565_v10, %v1339_v63 }
 0x473   : > { %v1357_v2 = vmax.f32 %v1340_v0, 0.0  ;;  %v2635_v0 = vld [vmem:[%s2742_s1 + $0x8] ss:$0 sm:$0xff] }
 0x475   : > { %v1369_v3 = vpack.c.bf16 %v1357_v2, %v1356_v1  ;;  %v2154_v1 = vld [vmem:[%s2753_s12 + $0x8] sm:$0xff] }
 0x476   : > { %1759 = vmatpush.bf16.msra.mxu1 %v2154_v1 }
 0x477   : > { %2071 = vmatmul.msk.bf16.gmra.mxu2 %vm1038_vm3, %v1369_v3 }
 0x484   : > { %v1417_v4 = vpop.f32.mrf.mxu2 }
 0x485   : > { %v1418_v7 = vadd.f32 %v2600_v5, %v1417_v4 }
 0x487   : > { %v1457_v10 = vmax.f32 %v1418_v7, 0.0 }
 0x48c   : > { %v1419_v8 = vpop.f32.mrf.mxu2 }
 0x48d   : > { %v1420_v9 = vadd.f32 %v2600_v5, %v1419_v8 }
 0x48f   : > { %v1458_v11 = vmax.f32 %v1420_v9, 0.0 }
 0x491   : > { %v1477_v12 = vpack.c.bf16 %v1458_v11, %v1457_v10 }
 0x493   : > { %2080 = vmatmul.msk.bf16.vlgmr.msra.gmra.mxu3 %vm1038_vm3, %v1477_v12 }
 0x494   : > { %v1422_v13 = vpop.f32.mrf.mxu2 }
 0x495   : > { %v1423_v14 = vadd.f32 %v2600_v5, %v1422_v13 }
 0x497   : > { %v1459_v17 = vmax.f32 %v1423_v14, 0.0 }
 0x49c   : > { %v1424_v15 = vpop.f32.mrf.mxu2 }
 0x49d   : > { %v1425_v16 = vadd.f32 %v2600_v5, %v1424_v15 }
 0x49f   : > { %v1460_v18 = vmax.f32 %v1425_v16, 0.0 }
 0x4a1   : > { %v1478_v19 = vpack.c.bf16 %v1460_v18, %v1459_v17 }
 0x4a3   : > { %2081 = vmatmul.msk.bf16.gmra.mxu3 %vm1038_vm3, %v1478_v19 }
 0x4a4   : > { %v1427_v21 = vpop.f32.mrf.mxu2 }
 0x4a5   : > { %v1428_v22 = vadd.f32 %v2600_v5, %v1427_v21 }
 0x4a7   : > { %v1461_v24 = vmax.f32 %v1428_v22, 0.0 }
 0x4ac   : > { %v1429_v20 = vpop.f32.mrf.mxu2 }
 0x4ad   : > { %v1430_v23 = vadd.f32 %v2600_v5, %v1429_v20 }
 0x4af   : > { %v1462_v26 = vmax.f32 %v1430_v23, 0.0 }
 0x4b1   : > { %v1479_v27 = vpack.c.bf16 %v1462_v26, %v1461_v24 }
 0x4b3   : > { %2082 = vmatmul.msk.bf16.gmra.mxu3 %vm1038_vm3, %v1479_v27 }
 0x4b4   : > { %v1432_v25 = vpop.f32.mrf.mxu2 }
 0x4b5   : > { %v1433_v28 = vadd.f32 %v2600_v5, %v1432_v25 }
 0x4b7   : > { %v1463_v30 = vmax.f32 %v1433_v28, 0.0 }
 0x4bc   : > { %v1434_v29 = vpop.f32.mrf.mxu2 }
 0x4bd   : > { %v1435_v31 = vadd.f32 %v2600_v5, %v1434_v29  ;;  %v2153_v29 = vld [vmem:[%s2753_s12] sm:$0xff] }
 0x4be   : > { %1760 = vmatpush.bf16.msra.mxu1 %v2153_v29 }
 0x4bf   : > { %v1464_v32 = vmax.f32 %v1435_v31, 0.0 }
 0x4c1   : > { %v1480_v33 = vpack.c.bf16 %v1464_v32, %v1463_v30 }
 0x4c3   : > { %2083 = vmatmul.msk.bf16.gmra.mxu3 %vm1038_vm3, %v1480_v33 }
 0x4c4   : > { %v1437_v35 = vpop.f32.mrf.mxu2 }
 0x4c5   : > { %v1438_v36 = vadd.f32 %v2600_v5, %v1437_v35 }
 0x4c7   : > { %v1465_v39 = vmax.f32 %v1438_v36, 0.0 }
 0x4cc   : > { %v1439_v34 = vpop.f32.mrf.mxu2 }
 0x4cd   : > { %v1440_v37 = vadd.f32 %v2600_v5, %v1439_v34 }
 0x4cf   : > { %v1466_v40 = vmax.f32 %v1440_v37, 0.0 }
 0x4d1   : > { %v1481_v41 = vpack.c.bf16 %v1466_v40, %v1465_v39 }
 0x4d3   : > { %2084 = vmatmul.msk.bf16.gmra.mxu3 %vm1038_vm3, %v1481_v41 }
 0x4d4   : > { %v1442_v42 = vpop.f32.mrf.mxu2 }
 0x4d5   : > { %v1443_v43 = vadd.f32 %v2600_v5, %v1442_v42 }
 0x4d7   : > { %v1467_v46 = vmax.f32 %v1443_v43, 0.0 }
 0x4dc   : > { %v1444_v44 = vpop.f32.mrf.mxu2 }
 0x4dd   : > { %v1445_v45 = vadd.f32 %v2600_v5, %v1444_v44 }
 0x4df   : > { %v1468_v47 = vmax.f32 %v1445_v45, 0.0 }
 0x4e1   : > { %v1482_v48 = vpack.c.bf16 %v1468_v47, %v1467_v46 }
 0x4e3   : > { %2085 = vmatmul.msk.bf16.gmra.mxu3 %vm1038_vm3, %v1482_v48 }
 0x4ea   : > { %v1447_v49 = vpop.f32.mrf.mxu2 }
 0x4eb   : > { %v1448_v50 = vadd.f32 %v2600_v5, %v1447_v49 }
 0x4ed   : > { %v1469_v53 = vmax.f32 %v1448_v50, 0.0 }
 0x4f2   : > { %v1449_v51 = vpop.f32.mrf.mxu2 }
 0x4f3   : > { %v1450_v52 = vadd.f32 %v2600_v5, %v1449_v51 }
 0x4f5   : > { %v1470_v54 = vmax.f32 %v1450_v52, 0.0 }
 0x4f7   : > { %v1483_v55 = vpack.c.bf16 %v1470_v54, %v1469_v53 }
 0x4f9   : > { %2086 = vmatmul.msk.bf16.gmra.mxu3 %vm1038_vm3, %v1483_v55 }
 0x4fa   : > { %v1452_v56 = vpop.f32.mrf.mxu2 }
 0x4fb   : > { %v1453_v57 = vadd.f32 %v2600_v5, %v1452_v56 }
 0x4fd   : > { %v1471_v60 = vmax.f32 %v1453_v57, 0.0 }
 0x502   : > { %v1454_v58 = vpop.f32.mrf.mxu2 }
 0x503   : > { %v1455_v59 = vadd.f32 %v2600_v5, %v1454_v58 }
 0x505   : > { %v1472_v61 = vmax.f32 %v1455_v59, 0.0  ;;  %v2185_v59 = vld [vmem:[%s2742_s1 + $0x9] ss:$0 sm:$0xff] }
 0x507   : > { %v1484_v62 = vpack.c.bf16 %v1472_v61, %v1471_v60 }
 0x509   : > { %2087 = vmatmul.msk.bf16.gmra.mxu3 %vm1038_vm3, %v1484_v62 }
 0x516   : > { %v1532_v63 = vpop.f32.mrf.mxu3 }
 0x517   : > { %v1533_v2 = vadd.f32 %v2635_v0, %v1532_v63 }
 0x519   : > { %v1572_v5 = vmax.f32 %v1533_v2, 0.0 }
 0x51e   : > { %v1534_v3 = vpop.f32.mrf.mxu3 }
 0x51f   : > { %v1535_v4 = vadd.f32 %v2635_v0, %v1534_v3 }
 0x521   : > { %v1573_v6 = vmax.f32 %v1535_v4, 0.0 }
 0x523   : > { %v1592_v7 = vpack.c.bf16 %v1573_v6, %v1572_v5 }
 0x525   : > { %2096 = vmatmul.msk.bf16.vlgmr.msra.gmra.mxu0 %vm1038_vm3, %v1592_v7 }
 0x526   : > { %v1537_v8 = vpop.f32.mrf.mxu3 }
 0x527   : > { %v1538_v9 = vadd.f32 %v2635_v0, %v1537_v8 }
 0x529   : > { %v1574_v12 = vmax.f32 %v1538_v9, 0.0 }
 0x52e   : > { %v1539_v10 = vpop.f32.mrf.mxu3 }
 0x52f   : > { %v1540_v11 = vadd.f32 %v2635_v0, %v1539_v10 }
 0x531   : > { %v1575_v13 = vmax.f32 %v1540_v11, 0.0 }
 0x533   : > { %v1593_v14 = vpack.c.bf16 %v1575_v13, %v1574_v12 }
 0x535   : > { %2097 = vmatmul.msk.bf16.gmra.mxu0 %vm1038_vm3, %v1593_v14 }
 0x536   : > { %v1542_v15 = vpop.f32.mrf.mxu3 }
 0x537   : > { %v1543_v16 = vadd.f32 %v2635_v0, %v1542_v15 }
 0x539   : > { %v1576_v19 = vmax.f32 %v1543_v16, 0.0 }
 0x53e   : > { %v1544_v17 = vpop.f32.mrf.mxu3 }
 0x53f   : > { %v1545_v18 = vadd.f32 %v2635_v0, %v1544_v17 }
 0x541   : > { %v1577_v21 = vmax.f32 %v1545_v18, 0.0 }
 0x543   : > { %v1594_v22 = vpack.c.bf16 %v1577_v21, %v1576_v19 }
 0x545   : > { %2098 = vmatmul.msk.bf16.gmra.mxu0 %vm1038_vm3, %v1594_v22 }
 0x546   : > { %v1547_v20 = vpop.f32.mrf.mxu3 }
 0x547   : > { %v1548_v23 = vadd.f32 %v2635_v0, %v1547_v20 }
 0x549   : > { %v1578_v27 = vmax.f32 %v1548_v23, 0.0 }
 0x54e   : > { %v1549_v24 = vpop.f32.mrf.mxu3 }
 0x54f   : > { %v1550_v26 = vadd.f32 %v2635_v0, %v1549_v24 }
 0x551   : > { %v1579_v25 = vmax.f32 %v1550_v26, 0.0 }
 0x553   : > { %v1595_v28 = vpack.c.bf16 %v1579_v25, %v1578_v27 }
 0x555   : > { %2099 = vmatmul.msk.bf16.gmra.mxu0 %vm1038_vm3, %v1595_v28 }
 0x556   : > { %v1552_v31 = vpop.f32.mrf.mxu3 }
 0x557   : > { %v1553_v30 = vadd.f32 %v2635_v0, %v1552_v31 }
 0x559   : > { %v1580_v35 = vmax.f32 %v1553_v30, 0.0 }
 0x55e   : > { %v1554_v32 = vpop.f32.mrf.mxu3 }
 0x55f   : > { %v1555_v33 = vadd.f32 %v2635_v0, %v1554_v32 }
 0x561   : > { %v1581_v36 = vmax.f32 %v1555_v33, 0.0 }
 0x563   : > { %v1596_v34 = vpack.c.bf16 %v1581_v36, %v1580_v35 }
 0x565   : > { %2100 = vmatmul.msk.bf16.gmra.mxu0 %vm1038_vm3, %v1596_v34 }
 0x566   : > { %v1557_v37 = vpop.f32.mrf.mxu3 }
 0x567   : > { %v1558_v38 = vadd.f32 %v2635_v0, %v1557_v37 }
 0x569   : > { %v1582_v41 = vmax.f32 %v1558_v38, 0.0 }
 0x56e   : > { %v1559_v39 = vpop.f32.mrf.mxu3 }
 0x56f   : > { %v1560_v40 = vadd.f32 %v2635_v0, %v1559_v39 }
 0x571   : > { %v1583_v42 = vmax.f32 %v1560_v40, 0.0 }
 0x573   : > { %v1597_v43 = vpack.c.bf16 %v1583_v42, %v1582_v41 }
 0x575   : > { %2101 = vmatmul.msk.bf16.gmra.mxu0 %vm1038_vm3, %v1597_v43 }
 0x57c   : > { %v1562_v44 = vpop.f32.mrf.mxu3 }
 0x57d   : > { %v1563_v45 = vadd.f32 %v2635_v0, %v1562_v44 }
 0x57f   : > { %v1584_v48 = vmax.f32 %v1563_v45, 0.0 }
 0x584   : > { %v1564_v46 = vpop.f32.mrf.mxu3 }
 0x585   : > { %v1565_v47 = vadd.f32 %v2635_v0, %v1564_v46 }
 0x587   : > { %v1585_v49 = vmax.f32 %v1565_v47, 0.0 }
 0x589   : > { %v1598_v50 = vpack.c.bf16 %v1585_v49, %v1584_v48 }
 0x58b   : > { %2102 = vmatmul.msk.bf16.gmra.mxu0 %vm1038_vm3, %v1598_v50 }
 0x58c   : > { %v1567_v51 = vpop.f32.mrf.mxu3 }
 0x58d   : > { %v1568_v52 = vadd.f32 %v2635_v0, %v1567_v51  ;;  %v2681_v51 = vld [vmem:[%s2742_s1 + $0xa] ss:$0 sm:$0xff] }
 0x58f   : > { %v1586_v55 = vmax.f32 %v1568_v52, 0.0 }
 0x594   : > { %v1569_v53 = vpop.f32.mrf.mxu3 }
 0x595   : > { %v1570_v54 = vadd.f32 %v2635_v0, %v1569_v53 }
 0x597   : > { %v1587_v56 = vmax.f32 %v1570_v54, 0.0 }
 0x599   : > { %v1599_v57 = vpack.c.bf16 %v1587_v56, %v1586_v55 }
 0x59b   : > { %2103 = vmatmul.msk.bf16.gmra.mxu0 %vm1038_vm3, %v1599_v57 }
 0x5a2   : > { %v1647_v58 = vpop.f32.mrf.mxu0 }
 0x5a3   : > { %v1648_v60 = vadd.f32 %v2185_v59, %v1647_v58 }
 0x5a5   : > { %v1687_v63 = vmax.f32 %v1648_v60, 0.0 }
 0x5aa   : > { %v1649_v61 = vpop.f32.mrf.mxu0 }
 0x5ab   : > { %v1650_v62 = vadd.f32 %v2185_v59, %v1649_v61 }
 0x5ad   : > { %v1688_v1 = vmax.f32 %v1650_v62, 0.0 }
 0x5af   : > { %v1707_v2 = vpack.c.bf16 %v1688_v1, %v1687_v63 }
 0x5b1   : > { %2112 = vmatmul.msk.bf16.vlgmr.msra.gmra.mxu1 %vm1038_vm3, %v1707_v2 }
 0x5b2   : > { %v1652_v3 = vpop.f32.mrf.mxu0 }
 0x5b3   : > { %v1653_v0 = vadd.f32 %v2185_v59, %v1652_v3 }
 0x5b5   : > { %v1689_v6 = vmax.f32 %v1653_v0, 0.0 }
 0x5ba   : > { %v1654_v4 = vpop.f32.mrf.mxu0 }
 0x5bb   : > { %v1655_v5 = vadd.f32 %v2185_v59, %v1654_v4 }
 0x5bd   : > { %v1690_v7 = vmax.f32 %v1655_v5, 0.0 }
 0x5bf   : > { %v1708_v8 = vpack.c.bf16 %v1690_v7, %v1689_v6 }
 0x5c1   : > { %2113 = vmatmul.msk.bf16.gmra.mxu1 %vm1038_vm3, %v1708_v8 }
 0x5c2   : > { %v1657_v9 = vpop.f32.mrf.mxu0 }
 0x5c3   : > { %v1658_v10 = vadd.f32 %v2185_v59, %v1657_v9 }
 0x5c5   : > { %v1691_v13 = vmax.f32 %v1658_v10, 0.0 }
 0x5ca   : > { %v1659_v11 = vpop.f32.mrf.mxu0 }
 0x5cb   : > { %v1660_v12 = vadd.f32 %v2185_v59, %v1659_v11 }
 0x5cd   : > { %v1692_v14 = vmax.f32 %v1660_v12, 0.0 }
 0x5cf   : > { %v1709_v15 = vpack.c.bf16 %v1692_v14, %v1691_v13 }
 0x5d1   : > { %2114 = vmatmul.msk.bf16.gmra.mxu1 %vm1038_vm3, %v1709_v15 }
 0x5d2   : > { %v1662_v16 = vpop.f32.mrf.mxu0 }
 0x5d3   : > { %v1663_v17 = vadd.f32 %v2185_v59, %v1662_v16 }
 0x5d5   : > { %v1693_v21 = vmax.f32 %v1663_v17, 0.0 }
 0x5da   : > { %v1664_v18 = vpop.f32.mrf.mxu0 }
 0x5db   : > { %v1665_v19 = vadd.f32 %v2185_v59, %v1664_v18 }
 0x5dd   : > { %v1694_v22 = vmax.f32 %v1665_v19, 0.0 }
 0x5df   : > { %v1710_v20 = vpack.c.bf16 %v1694_v22, %v1693_v21 }
 0x5e1   : > { %2115 = vmatmul.msk.bf16.gmra.mxu1 %vm1038_vm3, %v1710_v20 }
 0x5e2   : > { %v1667_v23 = vpop.f32.mrf.mxu0 }
 0x5e3   : > { %v1668_v24 = vadd.f32 %v2185_v59, %v1667_v23 }
 0x5e5   : > { %v1695_v25 = vmax.f32 %v1668_v24, 0.0 }
 0x5ea   : > { %v1669_v26 = vpop.f32.mrf.mxu0 }
 0x5eb   : > { %v1670_v27 = vadd.f32 %v2185_v59, %v1669_v26 }
 0x5ed   : > { %v1696_v28 = vmax.f32 %v1670_v27, 0.0 }
 0x5ef   : > { %v1711_v29 = vpack.c.bf16 %v1696_v28, %v1695_v25 }
 0x5f1   : > { %2116 = vmatmul.msk.bf16.gmra.mxu1 %vm1038_vm3, %v1711_v29 }
 0x5f2   : > { %v1672_v31 = vpop.f32.mrf.mxu0 }
 0x5f3   : > { %v1673_v30 = vadd.f32 %v2185_v59, %v1672_v31 }
 0x5f5   : > { %v1697_v35 = vmax.f32 %v1673_v30, 0.0 }
 0x5fa   : > { %v1674_v32 = vpop.f32.mrf.mxu0 }
 0x5fb   : > { %v1675_v33 = vadd.f32 %v2185_v59, %v1674_v32 }
 0x5fd   : > { %v1698_v36 = vmax.f32 %v1675_v33, 0.0 }
 0x5ff   : > { %v1712_v34 = vpack.c.bf16 %v1698_v36, %v1697_v35 }
 0x601   : > { %2117 = vmatmul.msk.bf16.gmra.mxu1 %vm1038_vm3, %v1712_v34 }
 0x608   : > { %v1677_v37 = vpop.f32.mrf.mxu0 }
 0x609   : > { %v1678_v38 = vadd.f32 %v2185_v59, %v1677_v37 }
 0x60b   : > { %v1699_v41 = vmax.f32 %v1678_v38, 0.0 }
 0x610   : > { %v1679_v39 = vpop.f32.mrf.mxu0 }
 0x611   : > { %v1680_v40 = vadd.f32 %v2185_v59, %v1679_v39 }
 0x613   : > { %v1700_v42 = vmax.f32 %v1680_v40, 0.0 }
 0x615   : > { %v1713_v43 = vpack.c.bf16 %v1700_v42, %v1699_v41 }
 0x617   : > { %2118 = vmatmul.msk.bf16.gmra.mxu1 %vm1038_vm3, %v1713_v43 }
 0x618   : > { %v1682_v44 = vpop.f32.mrf.mxu0 }
 0x619   : > { %v1683_v45 = vadd.f32 %v2185_v59, %v1682_v44 }
 0x61b   : > { %v1701_v48 = vmax.f32 %v1683_v45, 0.0 }
 0x620   : > { %v1684_v46 = vpop.f32.mrf.mxu0 }
 0x621   : > { %v1685_v47 = vadd.f32 %v2185_v59, %v1684_v46 }
 0x623   : > { %v1702_v49 = vmax.f32 %v1685_v47, 0.0 }
 0x625   : > { %v1714_v50 = vpack.c.bf16 %v1702_v49, %v1701_v48 }
 0x627   : > { %2119 = vmatmul.msk.bf16.gmra.mxu1 %vm1038_vm3, %v1714_v50 }
 0x62e   : > { %v1762_v52 = vpop.f32.mrf.mxu1 }
 0x62f   : > { %v1763_v53 = vadd.f32 %v2681_v51, %v1762_v52 }
 0x631   : > { %v1802_v54 = vmax.f32 %v1763_v53, 0.0 }
 0x633   : > { %1819 = vst.msk [vmem:[%s2689_s21] sm:$0xff] %vm1818_vm4, %v1802_v54 }
 0x636   : > { %v1764_v55 = vpop.f32.mrf.mxu1 }
 0x637   : > { %v1765_v56 = vadd.f32 %v2681_v51, %v1764_v55 }
 0x639   : > { %v1803_v57 = vmax.f32 %v1765_v56, 0.0 }
 0x63b   : > { %1820 = vst.msk [vmem:[%s2689_s21 + $0x8] sm:$0xff] %vm1818_vm4, %v1803_v57 }
 0x63e   : > { %v1767_v58 = vpop.f32.mrf.mxu1 }
 0x63f   : > { %v1768_v59 = vadd.f32 %v2681_v51, %v1767_v58 }
 0x641   : > { %v1804_v60 = vmax.f32 %v1768_v59, 0.0 }
 0x643   : > { %1821 = vst.msk [vmem:[%s2689_s21 + $0x10] sm:$0xff] %vm1818_vm4, %v1804_v60 }
 0x646   : > { %v1769_v61 = vpop.f32.mrf.mxu1 }
 0x647   : > { %v1770_v62 = vadd.f32 %v2681_v51, %v1769_v61 }
 0x649   : > { %v1805_v63 = vmax.f32 %v1770_v62, 0.0 }
 0x64b   : > { %1822 = vst.msk [vmem:[%s2689_s21 + $0x18] sm:$0xff] %vm1818_vm4, %v1805_v63 }
 0x64e   : > { %v1772_v1 = vpop.f32.mrf.mxu1 }
 0x64f   : > { %v1773_v2 = vadd.f32 %v2681_v51, %v1772_v1 }
 0x651   : > { %v1806_v3 = vmax.f32 %v1773_v2, 0.0 }
 0x653   : > { %1823 = vst.msk [vmem:[%s2689_s21 + $0x20] sm:$0xff] %vm1818_vm4, %v1806_v3 }
 0x656   : > { %v1774_v0 = vpop.f32.mrf.mxu1 }
 0x657   : > { %v1775_v4 = vadd.f32 %v2681_v51, %v1774_v0 }
 0x659   : > { %v1807_v5 = vmax.f32 %v1775_v4, 0.0 }
 0x65b   : > { %1824 = vst.msk [vmem:[%s2689_s21 + $0x28] sm:$0xff] %vm1818_vm4, %v1807_v5 }
 0x65e   : > { %v1777_v6 = vpop.f32.mrf.mxu1 }
 0x65f   : > { %v1778_v7 = vadd.f32 %v2681_v51, %v1777_v6 }
 0x661   : > { %v1808_v8 = vmax.f32 %v1778_v7, 0.0 }
 0x663   : > { %1825 = vst.msk [vmem:[%s2689_s21 + $0x30] sm:$0xff] %vm1818_vm4, %v1808_v8 }
 0x666   : > { %v1779_v9 = vpop.f32.mrf.mxu1 }
 0x667   : > { %v1780_v10 = vadd.f32 %v2681_v51, %v1779_v9 }
 0x669   : > { %v1809_v11 = vmax.f32 %v1780_v10, 0.0 }
 0x66b   : > { %1826 = vst.msk [vmem:[%s2689_s21 + $0x38] sm:$0xff] %vm1818_vm4, %v1809_v11 }
 0x66e   : > { %v1782_v12 = vpop.f32.mrf.mxu1 }
 0x66f   : > { %v1783_v13 = vadd.f32 %v2681_v51, %v1782_v12 }
 0x671   : > { %v1810_v14 = vmax.f32 %v1783_v13, 0.0 }
 0x673   : > { %1827 = vst.msk [vmem:[%s2689_s21 + $0x40] sm:$0xff] %vm1818_vm4, %v1810_v14 }
 0x676   : > { %v1784_v15 = vpop.f32.mrf.mxu1 }
 0x677   : > { %v1785_v16 = vadd.f32 %v2681_v51, %v1784_v15 }
 0x679   : > { %v1811_v17 = vmax.f32 %v1785_v16, 0.0 }
 0x67b   : > { %1828 = vst.msk [vmem:[%s2689_s21 + $0x48] sm:$0xff] %vm1818_vm4, %v1811_v17 }
 0x67e   : > { %v1787_v18 = vpop.f32.mrf.mxu1 }
 0x67f   : > { %v1788_v19 = vadd.f32 %v2681_v51, %v1787_v18 }
 0x681   : > { %v1812_v21 = vmax.f32 %v1788_v19, 0.0 }
 0x683   : > { %1829 = vst.msk [vmem:[%s2689_s21 + $0x50] sm:$0xff] %vm1818_vm4, %v1812_v21 }
 0x686   : > { %v1789_v22 = vpop.f32.mrf.mxu1 }
 0x687   : > { %v1790_v20 = vadd.f32 %v2681_v51, %v1789_v22 }
 0x689   : > { %v1813_v23 = vmax.f32 %v1790_v20, 0.0 }
 0x68b   : > { %1830 = vst.msk [vmem:[%s2689_s21 + $0x58] sm:$0xff] %vm1818_vm4, %v1813_v23 }
 0x694   : > { %v1792_v24 = vpop.f32.mrf.mxu1 }
 0x695   : > { %v1793_v26 = vadd.f32 %v2681_v51, %v1792_v24 }
 0x697   : > { %v1814_v27 = vmax.f32 %v1793_v26, 0.0 }
 0x699   : > { %1831 = vst.msk [vmem:[%s2689_s21 + $0x60] sm:$0xff] %vm1818_vm4, %v1814_v27 }
 0x69c   : > { %v1794_v25 = vpop.f32.mrf.mxu1 }
 0x69d   : > { %v1795_v28 = vadd.f32 %v2681_v51, %v1794_v25 }
 0x69f   : > { %v1815_v29 = vmax.f32 %v1795_v28, 0.0 }
 0x6a1   : > { %1832 = vst.msk [vmem:[%s2689_s21 + $0x68] sm:$0xff] %vm1818_vm4, %v1815_v29 }
 0x6a4   : > { %v1797_v31 = vpop.f32.mrf.mxu1 }
 0x6a5   : > { %v1798_v30 = vadd.f32 %v2681_v51, %v1797_v31 }
 0x6a7   : > { %v1816_v32 = vmax.f32 %v1798_v30, 0.0 }
 0x6a9   : > { %1833 = vst.msk [vmem:[%s2689_s21 + $0x70] sm:$0xff] %vm1818_vm4, %v1816_v32 }
 0x6ac   : > { %v1799_v33 = vpop.f32.mrf.mxu1 }
 0x6ad   : > { %v1800_v35 = vadd.f32 %v2681_v51, %v1799_v33 }
 0x6af   : > { %v1817_v36 = vmax.f32 %v1800_v35, 0.0 }
 0x6b1   : > { %1834 = vst.msk [vmem:[%s2689_s21 + $0x78] sm:$0xff] %vm1818_vm4, %v1817_v36 }
 0x6b2 PF: > { %s23_s25 = sadd.s32 1, %s2193_s25  }
 0x6b3   : > { %p20_p4 = scmp.ge.s32.totalorder %s23_s25, 4  }
 0x6b5   :  { %22 = sbr.rel (!%p20_p4) target bundleno = 1 (0x1), region = 102 }

</bundles_post_ra>
